<compile_context>
chip_gen: v7x
topology: tpu7x:2x2x1
jax: 0.10.0
libtpu: 0.0.40
codegen_flags: <defaults>
</compile_context>

<pallas_src>
import functools

import jax
import jax.numpy as jnp
from jax.experimental import pallas as pl
from jax.experimental.pallas import tpu as pltpu


_VMEM_LIMIT = 48 * 1024 * 1024  # fits every generation (v7x physical = 64 MiB)


def _bn_fold(gamma, beta, mean, var, eps=1e-5):
    scale = gamma / jnp.sqrt(var + eps)
    shift = beta - mean * scale
    return scale, shift


# ---------------------------------------------------------------------------
# Single fused kernel: expand 1x1 + BN + ReLU6  ->  depthwise kxk + BN + ReLU6
#                      ->  SE gate  ->  point 1x1 + BN.   One batch per step.
# ---------------------------------------------------------------------------
def _se_inverted_block_kernel(x_ref, w1_ref, s1_ref, wd_ref, s2_ref, col_ref,
                              wr_ref, br_ref, we_ref, be_ref, w3_ref, s3_ref,
                              o_ref, xp_ref, *, w, k, dilation, pad, inv_hw):
    cmid = xp_ref.shape[0]
    lpad = xp_ref.shape[1]
    hw = x_ref.shape[2]
    off0 = pad * (w + 1)          # zero prefix length of the flat padded scratch

    # Zero only the pad border of the persistent scratch (the interior is fully
    # overwritten below every step).  Cheap, and safe under "parallel" grid
    # semantics (no reliance on a one-time step-0 init per core).
    if pad > 0:
        xp_ref[:, 0:off0] = jnp.zeros((cmid, off0), jnp.float32)
        xp_ref[:, off0 + hw:lpad] = jnp.zeros((cmid, lpad - off0 - hw),
                                              jnp.float32)

    # ---- Stage 1: 1x1 expand conv (BN scale folded into weights) + ReLU6 ----
    y1 = jnp.dot(w1_ref[...], x_ref[0].astype(jnp.float32),
                 preferred_element_type=jnp.float32)            # (Cmid, HW)
    y1 = jnp.clip(y1 + s1_ref[...], 0.0, 6.0)
    xp_ref[:, pl.ds(off0, hw)] = y1                             # lane-dense store

    # ---- Stage 2: kxk depthwise conv (stride 1, 'same') + BN + ReLU6 ----
    # Tap (ih, iw) of flat output pixel j reads the flat scratch at
    # j + dy*W + dx with dy = ih*dil - pad, dx = iw*dil - pad.  Vertically
    # out-of-range taps land in the zero prefix/suffix; horizontally
    # out-of-range ones are killed by the per-column mask.
    taps = wd_ref[...]                                          # (Cmid, K, K)
    col = col_ref[...]                                          # (1, HW) int32
    acc = jnp.zeros((cmid, hw), jnp.float32)
    for iw in range(k):
        dx = iw * dilation - pad
        part = jnp.zeros((cmid, hw), jnp.float32)
        for ih in range(k):
            dy = ih * dilation - pad
            patch = xp_ref[:, pl.ds(off0 + dy * w + dx, hw)]    # (Cmid, HW)
            part = part + patch * taps[:, ih, iw][:, None]
        if dx == 0:
            acc = acc + part
        else:
            valid = jnp.logical_and(col + dx >= 0, col + dx < w)
            acc = acc + part * jnp.where(valid, 1.0, 0.0)
    yd = jnp.clip(acc + s2_ref[...], 0.0, 6.0)                  # (Cmid, HW)

    # ---- Stage 3: SE gate (pool -> reduce+ReLU -> expand -> hardsigmoid) ----
    pool = jnp.sum(yd, axis=1, keepdims=True) * inv_hw          # (Cmid, 1)
    red = jnp.maximum(
        jnp.dot(wr_ref[...], pool, preferred_element_type=jnp.float32)
        + br_ref[...], 0.0)                                     # (Cse, 1)
    exp = (jnp.dot(we_ref[...], red, preferred_element_type=jnp.float32)
           + be_ref[...])                                       # (Cmid, 1)
    gate = jnp.clip(exp * (1.0 / 6.0) + 0.5, 0.0, 1.0)          # hardsigmoid
    ydg = yd * gate                                             # gated, on-chip

    # ---- Stage 4: 1x1 point conv (BN scale folded) + shift (no activation) ---
    out = (jnp.dot(w3_ref[...], ydg, preferred_element_type=jnp.float32)
           + s3_ref[...])                                       # (Cout, HW)
    o_ref[0] = out.astype(o_ref.dtype)


# ---------------------------------------------------------------------------
# Full SeInvertedBlock forward (inference).
# ---------------------------------------------------------------------------
def se_inverted_block_forward(x_nchw, params, *, stride=1, dilation=1, eps=1e-5):
    # TODO(synk): stride > 1 needs the strided-window depthwise variant.
    assert stride == 1, "fused kernel implements stride == 1 only"
    n, cin, h, w = x_nchw.shape
    dtype = x_nchw.dtype
    hw = h * w

    # ---- fold BN into weights / per-channel shifts (inference) ----
    w1 = params["w1"][:, :cin, 0, 0]                                  # (Cmid, Cin)
    scale1, shift1 = _bn_fold(params["bn1_gamma"], params["bn1_beta"],
                              params["bn1_mean"], params["bn1_var"], eps)
    w1s = (w1 * scale1[:, None]).astype(jnp.float32)
    cmid = w1s.shape[0]

    wd = params["w_dw"][:cmid, 0]                                     # (Cmid, K, K)
    k = int(wd.shape[-1])
    assert k % 2 == 1, "kernel size must be odd"
    pad = (k // 2) * dilation
    scale2, shift2 = _bn_fold(params["bn2_gamma"], params["bn2_beta"],
                              params["bn2_mean"], params["bn2_var"], eps)
    taps = (wd * scale2[:, None, None]).astype(jnp.float32)

    wr = params["w_se_reduce"][:, :cmid, 0, 0].astype(jnp.float32)    # (Cse, Cmid)
    br = params["b_se_reduce"].reshape(-1, 1).astype(jnp.float32)
    we = params["w_se_expand"][:cmid, :, 0, 0].astype(jnp.float32)    # (Cmid, Cse)
    be = params["b_se_expand"][:cmid].reshape(-1, 1).astype(jnp.float32)
    cse = wr.shape[0]

    w3 = params["w3"][:, :cmid, 0, 0]                                 # (Cout, Cmid)
    scale3, shift3 = _bn_fold(params["bn3_gamma"], params["bn3_beta"],
                              params["bn3_mean"], params["bn3_var"], eps)
    w3s = (w3 * scale3[:, None]).astype(jnp.float32)
    cout = w3s.shape[0]

    # column index of every flat spatial position (for horizontal pad masks)
    col = (jnp.arange(hw, dtype=jnp.int32) % w).reshape(1, hw)

    off0 = pad * (w + 1)
    lpad = hw + 2 * off0

    kernel = functools.partial(_se_inverted_block_kernel,
                               w=w, k=k, dilation=dilation, pad=pad,
                               inv_hw=1.0 / hw)

    flops = int(2 * n * hw * (cmid * cin + cmid * k * k + cout * cmid)
                + 4 * n * cse * cmid)
    bytes_accessed = int(4 * (n * cin * hw + n * cout * hw
                              + w1s.size + taps.size + wr.size + we.size
                              + w3s.size + 4 * cmid + 2 * cse + cout))

    out_flat = pl.pallas_call(
        kernel,
        out_shape=jax.ShapeDtypeStruct((n, cout, hw), dtype),
        grid_spec=pltpu.PrefetchScalarGridSpec(
            num_scalar_prefetch=0,
            grid=(n,),
            in_specs=[
                pl.BlockSpec((1, cin, hw), lambda i: (i, 0, 0)),
                pl.BlockSpec((cmid, cin), lambda i: (0, 0)),      # w1 (scaled)
                pl.BlockSpec((cmid, 1), lambda i: (0, 0)),        # shift1
                pl.BlockSpec((cmid, k, k), lambda i: (0, 0, 0)),  # dw taps
                pl.BlockSpec((cmid, 1), lambda i: (0, 0)),        # shift2
                pl.BlockSpec((1, hw), lambda i: (0, 0)),          # col index
                pl.BlockSpec((cse, cmid), lambda i: (0, 0)),      # SE reduce W
                pl.BlockSpec((cse, 1), lambda i: (0, 0)),         # SE reduce b
                pl.BlockSpec((cmid, cse), lambda i: (0, 0)),      # SE expand W
                pl.BlockSpec((cmid, 1), lambda i: (0, 0)),        # SE expand b
                pl.BlockSpec((cout, cmid), lambda i: (0, 0)),     # w3 (scaled)
                pl.BlockSpec((cout, 1), lambda i: (0, 0)),        # shift3
            ],
            out_specs=pl.BlockSpec((1, cout, hw), lambda i: (i, 0, 0)),
            scratch_shapes=[pltpu.VMEM((cmid, lpad), jnp.float32)],
        ),
        compiler_params=pltpu.CompilerParams(
            dimension_semantics=("parallel",),
            vmem_limit_bytes=_VMEM_LIMIT),
        cost_estimate=pl.CostEstimate(flops=flops, transcendentals=0,
                                      bytes_accessed=bytes_accessed),
    )(x_nchw.reshape(n, cin, hw),
      w1s, shift1.reshape(cmid, 1).astype(jnp.float32),
      taps, shift2.reshape(cmid, 1).astype(jnp.float32),
      col,
      wr, br, we, be,
      w3s, shift3.reshape(cout, 1).astype(jnp.float32))

    return out_flat.reshape(n, cout, h, w)


# ---------------------------------------------------------------------------
# Pure-JAX reference of the same forward pass (for the correctness check).
# ---------------------------------------------------------------------------
def _reference(x, p, *, stride, dilation, eps=1e-5):
    def bn(t, g, b, m, v):
        s = g / jnp.sqrt(v + eps)
        return t * s.reshape(1, -1, 1, 1) + (b - m * s).reshape(1, -1, 1, 1)

    y = jax.lax.conv_general_dilated(
        x, p["w1"], (1, 1), ((0, 0), (0, 0)),
        dimension_numbers=("NCHW", "OIHW", "NCHW"))
    y = jnp.clip(bn(y, p["bn1_gamma"], p["bn1_beta"],
                    p["bn1_mean"], p["bn1_var"]), 0.0, 6.0)

    cmid = y.shape[1]
    k = p["w_dw"].shape[2]
    pad = (k // 2) * dilation
    y = jax.lax.conv_general_dilated(
        y, p["w_dw"], (stride, stride), ((pad, pad), (pad, pad)),
        rhs_dilation=(dilation, dilation),
        dimension_numbers=("NCHW", "OIHW", "NCHW"),
        feature_group_count=cmid)
    y = jnp.clip(bn(y, p["bn2_gamma"], p["bn2_beta"],
                    p["bn2_mean"], p["bn2_var"]), 0.0, 6.0)

    pool = jnp.mean(y, axis=(2, 3), keepdims=True)
    r = jnp.einsum("oc,ncij->noij", p["w_se_reduce"][:, :, 0, 0], pool)
    r = jnp.maximum(r + p["b_se_reduce"].reshape(1, -1, 1, 1), 0.0)
    e = jnp.einsum("oc,ncij->noij", p["w_se_expand"][:, :, 0, 0], r)
    e = e + p["b_se_expand"].reshape(1, -1, 1, 1)
    gate = jnp.clip(e / 6.0 + 0.5, 0.0, 1.0)
    y = y * gate

    z = jax.lax.conv_general_dilated(
        y, p["w3"], (1, 1), ((0, 0), (0, 0)),
        dimension_numbers=("NCHW", "OIHW", "NCHW"))
    return bn(z, p["bn3_gamma"], p["bn3_beta"], p["bn3_mean"], p["bn3_var"])


if __name__ == "__main__":
    key = jax.random.PRNGKey(0)
    keys = jax.random.split(key, 20)

    in_channels, out_channels = 4, 4
    kernel_size, stride, dilation = 3, 1, 1
    expand_ratio = 6
    batch, hsp, wsp = 2, 16, 16

    cmid = round(in_channels * expand_ratio)          # 24
    cse = max(round(cmid / 4), 16)                    # SE mid (min_dim=16) -> 16

    def normal(k_, shape, s=0.1):
        return jax.random.normal(k_, shape, jnp.float32) * s

    params = {
        "w1": normal(keys[0], (cmid, in_channels, 1, 1)),
        "bn1_gamma": 1.0 + normal(keys[1], (cmid,)),
        "bn1_beta": normal(keys[2], (cmid,)),
        "bn1_mean": normal(keys[3], (cmid,)),
        "bn1_var": jax.random.uniform(keys[4], (cmid,), jnp.float32, 0.5, 1.5),
        "w_dw": normal(keys[5], (cmid, 1, kernel_size, kernel_size)),
        "bn2_gamma": 1.0 + normal(keys[6], (cmid,)),
        "bn2_beta": normal(keys[7], (cmid,)),
        "bn2_mean": normal(keys[8], (cmid,)),
        "bn2_var": jax.random.uniform(keys[9], (cmid,), jnp.float32, 0.5, 1.5),
        "w_se_reduce": normal(keys[10], (cse, cmid, 1, 1)),
        "b_se_reduce": normal(keys[11], (cse,)),
        "w_se_expand": normal(keys[12], (cmid, cse, 1, 1)),
        "b_se_expand": normal(keys[13], (cmid,)),
        "w3": normal(keys[14], (out_channels, cmid, 1, 1)),
        "bn3_gamma": 1.0 + normal(keys[15], (out_channels,)),
        "bn3_beta": normal(keys[16], (out_channels,)),
        "bn3_mean": normal(keys[17], (out_channels,)),
        "bn3_var": jax.random.uniform(keys[18], (out_channels,), jnp.float32, 0.5, 1.5),
    }
    x = jax.random.normal(keys[19], (batch, in_channels, hsp, wsp), jnp.float32)

    out = se_inverted_block_forward(x, params, stride=stride, dilation=dilation)
    out = jax.block_until_ready(out)

    ref = _reference(x, params, stride=stride, dilation=dilation)
    assert out.shape == ref.shape == (batch, out_channels, hsp, wsp), (out.shape, ref.shape)
    err = float(jnp.max(jnp.abs(out - ref)))
    assert err < 1e-4, f"max abs err {err}"

    print("KERNEL_OK")
</pallas_src>

<mosaic_0001>
module attributes {stable_mosaic.version = 11 : i64} {
  func.func @_se_inverted_block_kernel(%arg0: i32, %arg1: memref<1x4x256xf32, #tpu.memory_space<vmem>>, %arg2: memref<24x4xf32, #tpu.memory_space<vmem>>, %arg3: memref<24x1xf32, #tpu.memory_space<vmem>>, %arg4: memref<24x3x3xf32, #tpu.memory_space<vmem>>, %arg5: memref<24x1xf32, #tpu.memory_space<vmem>>, %arg6: memref<1x256xi32, #tpu.memory_space<vmem>>, %arg7: memref<16x24xf32, #tpu.memory_space<vmem>>, %arg8: memref<16x1xf32, #tpu.memory_space<vmem>>, %arg9: memref<24x16xf32, #tpu.memory_space<vmem>>, %arg10: memref<24x1xf32, #tpu.memory_space<vmem>>, %arg11: memref<4x24xf32, #tpu.memory_space<vmem>>, %arg12: memref<4x1xf32, #tpu.memory_space<vmem>>, %arg13: memref<1x4x256xf32, #tpu.memory_space<vmem>>, %arg14: memref<24x290xf32, #tpu.memory_space<vmem>>) attributes {dimension_semantics = [#tpu.dimension_semantics<parallel>], iteration_bounds = array<i64: 2>, scalar_prefetch = 0 : i64, scratch_operands = 1 : i64, tpu.core_type = #tpu.core_type<tc>, window_params = [{transform_indices = @transform_0, window_bounds = array<i64: 1, 4, 256>}, {pipeline_mode = #tpu.pipeline_mode<synchronous>, transform_indices = @transform_1, window_bounds = array<i64: 24, 4>}, {pipeline_mode = #tpu.pipeline_mode<synchronous>, transform_indices = @transform_2, window_bounds = array<i64: 24, 1>}, {pipeline_mode = #tpu.pipeline_mode<synchronous>, transform_indices = @transform_3, window_bounds = array<i64: 24, 3, 3>}, {pipeline_mode = #tpu.pipeline_mode<synchronous>, transform_indices = @transform_4, window_bounds = array<i64: 24, 1>}, {pipeline_mode = #tpu.pipeline_mode<synchronous>, transform_indices = @transform_5, window_bounds = array<i64: 1, 256>}, {pipeline_mode = #tpu.pipeline_mode<synchronous>, transform_indices = @transform_6, window_bounds = array<i64: 16, 24>}, {pipeline_mode = #tpu.pipeline_mode<synchronous>, transform_indices = @transform_7, window_bounds = array<i64: 16, 1>}, {pipeline_mode = #tpu.pipeline_mode<synchronous>, transform_indices = @transform_8, window_bounds = array<i64: 24, 16>}, {pipeline_mode = #tpu.pipeline_mode<synchronous>, transform_indices = @transform_9, window_bounds = array<i64: 24, 1>}, {pipeline_mode = #tpu.pipeline_mode<synchronous>, transform_indices = @transform_10, window_bounds = array<i64: 4, 24>}, {pipeline_mode = #tpu.pipeline_mode<synchronous>, transform_indices = @transform_11, window_bounds = array<i64: 4, 1>}, {transform_indices = @transform_12, window_bounds = array<i64: 1, 4, 256>}]} {
    %cst = arith.constant 0.000000e+00 : f32
    %0 = vector.broadcast %cst : f32 to vector<24x17xf32>
    %c0 = arith.constant 0 : index
    %c0_0 = arith.constant 0 : index
    %1 = vector.load %arg14[%c0, %c0_0] : memref<24x290xf32, #tpu.memory_space<vmem>>, vector<24x17xf32>
    tpu.vector_store %arg14[%c0, %c0_0], %0 {strides = array<i32>} : memref<24x290xf32, #tpu.memory_space<vmem>>, vector<24x17xf32>,
    %cst_1 = arith.constant 0.000000e+00 : f32
    %2 = vector.broadcast %cst_1 : f32 to vector<24x17xf32>
    %c0_2 = arith.constant 0 : index
    %c273 = arith.constant 273 : index
    %3 = vector.load %arg14[%c0_2, %c273] : memref<24x290xf32, #tpu.memory_space<vmem>>, vector<24x17xf32>
    tpu.vector_store %arg14[%c0_2, %c273], %2 {strides = array<i32>} : memref<24x290xf32, #tpu.memory_space<vmem>>, vector<24x17xf32>,
    %c0_3 = arith.constant 0 : index
    %c0_4 = arith.constant 0 : index
    %4 = vector.load %arg2[%c0_3, %c0_4] : memref<24x4xf32, #tpu.memory_space<vmem>>, vector<24x4xf32>
    %c0_5 = arith.constant 0 : index
    %c0_6 = arith.constant 0 : index
    %c0_7 = arith.constant 0 : index
    %5 = vector.load %arg1[%c0_5, %c0_6, %c0_7] : memref<1x4x256xf32, #tpu.memory_space<vmem>>, vector<1x4x256xf32>
    %6 = vector.shape_cast %5 : vector<1x4x256xf32> to vector<4x256xf32>
    %cst_8 = arith.constant dense<0.000000e+00> : vector<24x256xf32>
    %7 = tpu.matmul %4, %6, %cst_8 {dimension_numbers = #tpu.dot_dimension_numbers<[1], [0], [0], [1], [0, 0, 1, 1], [], []>} : vector<24x4xf32>, vector<4x256xf32>, vector<24x256xf32> -> vector<24x256xf32>
    %c0_9 = arith.constant 0 : index
    %c0_10 = arith.constant 0 : index
    %8 = vector.load %arg3[%c0_9, %c0_10] : memref<24x1xf32, #tpu.memory_space<vmem>>, vector<24x1xf32>
    %9 = vector.broadcast %8 : vector<24x1xf32> to vector<24x256xf32>
    %10 = arith.addf %7, %9 : vector<24x256xf32>
    %cst_11 = arith.constant 0.000000e+00 : f32
    %cst_12 = arith.constant 6.000000e+00 : f32
    %11 = vector.broadcast %cst_11 : f32 to vector<24x256xf32>
    %12 = arith.maximumf %11, %10 : vector<24x256xf32>
    %13 = vector.broadcast %cst_12 : f32 to vector<24x256xf32>
    %14 = arith.minimumf %13, %12 : vector<24x256xf32>
    %c0_13 = arith.constant 0 : index
    %c17 = arith.constant 17 : index
    %15 = vector.load %arg14[%c0_13, %c17] : memref<24x290xf32, #tpu.memory_space<vmem>>, vector<24x256xf32>
    tpu.vector_store %arg14[%c0_13, %c17], %14 {strides = array<i32>} : memref<24x290xf32, #tpu.memory_space<vmem>>, vector<24x256xf32>,
    %c0_14 = arith.constant 0 : index
    %c0_15 = arith.constant 0 : index
    %c0_16 = arith.constant 0 : index
    %16 = vector.load %arg4[%c0_14, %c0_15, %c0_16] : memref<24x3x3xf32, #tpu.memory_space<vmem>>, vector<24x3x3xf32>
    %c0_17 = arith.constant 0 : index
    %c0_18 = arith.constant 0 : index
    %17 = vector.load %arg6[%c0_17, %c0_18] : memref<1x256xi32, #tpu.memory_space<vmem>>, vector<1x256xi32>
    %cst_19 = arith.constant 0.000000e+00 : f32
    %18 = vector.broadcast %cst_19 : f32 to vector<24x256xf32>
    %cst_20 = arith.constant 0.000000e+00 : f32
    %19 = vector.broadcast %cst_20 : f32 to vector<24x256xf32>
    %c0_21 = arith.constant 0 : index
    %c0_22 = arith.constant 0 : index
    %20 = vector.load %arg14[%c0_21, %c0_22] : memref<24x290xf32, #tpu.memory_space<vmem>>, vector<24x256xf32>
    %21 = vector.extract_strided_slice %16 {offsets = [0, 0, 0], sizes = [24, 1, 1], strides = [1, 1, 1]} : vector<24x3x3xf32> to vector<24x1x1xf32>
    %22 = vector.shape_cast %21 : vector<24x1x1xf32> to vector<24xf32>
    %23 = vector.shape_cast %22 : vector<24xf32> to vector<24x1xf32>
    %24 = vector.broadcast %23 : vector<24x1xf32> to vector<24x256xf32>
    %25 = arith.mulf %20, %24 : vector<24x256xf32>
    %26 = arith.addf %19, %25 : vector<24x256xf32>
    %c0_23 = arith.constant 0 : index
    %c16 = arith.constant 16 : index
    %27 = vector.load %arg14[%c0_23, %c16] : memref<24x290xf32, #tpu.memory_space<vmem>>, vector<24x256xf32>
    %28 = vector.extract_strided_slice %16 {offsets = [0, 1, 0], sizes = [24, 1, 1], strides = [1, 1, 1]} : vector<24x3x3xf32> to vector<24x1x1xf32>
    %29 = vector.shape_cast %28 : vector<24x1x1xf32> to vector<24xf32>
    %30 = vector.shape_cast %29 : vector<24xf32> to vector<24x1xf32>
    %31 = vector.broadcast %30 : vector<24x1xf32> to vector<24x256xf32>
    %32 = arith.mulf %27, %31 : vector<24x256xf32>
    %33 = arith.addf %26, %32 : vector<24x256xf32>
    %c0_24 = arith.constant 0 : index
    %c32 = arith.constant 32 : index
    %34 = vector.load %arg14[%c0_24, %c32] : memref<24x290xf32, #tpu.memory_space<vmem>>, vector<24x256xf32>
    %35 = vector.extract_strided_slice %16 {offsets = [0, 2, 0], sizes = [24, 1, 1], strides = [1, 1, 1]} : vector<24x3x3xf32> to vector<24x1x1xf32>
    %36 = vector.shape_cast %35 : vector<24x1x1xf32> to vector<24xf32>
    %37 = vector.shape_cast %36 : vector<24xf32> to vector<24x1xf32>
    %38 = vector.broadcast %37 : vector<24x1xf32> to vector<24x256xf32>
    %39 = arith.mulf %34, %38 : vector<24x256xf32>
    %40 = arith.addf %33, %39 : vector<24x256xf32>
    %c-1_i32 = arith.constant -1 : i32
    %41 = vector.broadcast %c-1_i32 : i32 to vector<1x256xi32>
    %42 = arith.addi %17, %41 : vector<1x256xi32>
    %c0_i32 = arith.constant 0 : i32
    %43 = vector.broadcast %c0_i32 : i32 to vector<1x256xi32>
    %44 = arith.cmpi sge, %42, %43 : vector<1x256xi32>
    %c-1_i32_25 = arith.constant -1 : i32
    %45 = vector.broadcast %c-1_i32_25 : i32 to vector<1x256xi32>
    %46 = arith.addi %17, %45 : vector<1x256xi32>
    %c16_i32 = arith.constant 16 : i32
    %47 = vector.broadcast %c16_i32 : i32 to vector<1x256xi32>
    %48 = arith.cmpi slt, %46, %47 : vector<1x256xi32>
    %49 = arith.andi %44, %48 : vector<1x256xi1>
    %cst_26 = arith.constant 1.000000e+00 : f32
    %cst_27 = arith.constant 0.000000e+00 : f32
    %50 = vector.broadcast %cst_26 : f32 to vector<1x256xf32>
    %51 = vector.broadcast %cst_27 : f32 to vector<1x256xf32>
    %52 = arith.select %49, %50, %51 : vector<1x256xi1>, vector<1x256xf32>
    %53 = vector.broadcast %52 : vector<1x256xf32> to vector<24x256xf32>
    %54 = arith.mulf %40, %53 : vector<24x256xf32>
    %55 = arith.addf %18, %54 : vector<24x256xf32>
    %cst_28 = arith.constant 0.000000e+00 : f32
    %56 = vector.broadcast %cst_28 : f32 to vector<24x256xf32>
    %c0_29 = arith.constant 0 : index
    %c1 = arith.constant 1 : index
    %57 = vector.load %arg14[%c0_29, %c1] : memref<24x290xf32, #tpu.memory_space<vmem>>, vector<24x256xf32>
    %58 = vector.extract_strided_slice %16 {offsets = [0, 0, 1], sizes = [24, 1, 1], strides = [1, 1, 1]} : vector<24x3x3xf32> to vector<24x1x1xf32>
    %59 = vector.shape_cast %58 : vector<24x1x1xf32> to vector<24xf32>
    %60 = vector.shape_cast %59 : vector<24xf32> to vector<24x1xf32>
    %61 = vector.broadcast %60 : vector<24x1xf32> to vector<24x256xf32>
    %62 = arith.mulf %57, %61 : vector<24x256xf32>
    %63 = arith.addf %56, %62 : vector<24x256xf32>
    %c0_30 = arith.constant 0 : index
    %c17_31 = arith.constant 17 : index
    %64 = vector.load %arg14[%c0_30, %c17_31] : memref<24x290xf32, #tpu.memory_space<vmem>>, vector<24x256xf32>
    %65 = vector.extract_strided_slice %16 {offsets = [0, 1, 1], sizes = [24, 1, 1], strides = [1, 1, 1]} : vector<24x3x3xf32> to vector<24x1x1xf32>
    %66 = vector.shape_cast %65 : vector<24x1x1xf32> to vector<24xf32>
    %67 = vector.shape_cast %66 : vector<24xf32> to vector<24x1xf32>
    %68 = vector.broadcast %67 : vector<24x1xf32> to vector<24x256xf32>
    %69 = arith.mulf %64, %68 : vector<24x256xf32>
    %70 = arith.addf %63, %69 : vector<24x256xf32>
    %c0_32 = arith.constant 0 : index
    %c33 = arith.constant 33 : index
    %71 = vector.load %arg14[%c0_32, %c33] : memref<24x290xf32, #tpu.memory_space<vmem>>, vector<24x256xf32>
    %72 = vector.extract_strided_slice %16 {offsets = [0, 2, 1], sizes = [24, 1, 1], strides = [1, 1, 1]} : vector<24x3x3xf32> to vector<24x1x1xf32>
    %73 = vector.shape_cast %72 : vector<24x1x1xf32> to vector<24xf32>
    %74 = vector.shape_cast %73 : vector<24xf32> to vector<24x1xf32>
    %75 = vector.broadcast %74 : vector<24x1xf32> to vector<24x256xf32>
    %76 = arith.mulf %71, %75 : vector<24x256xf32>
    %77 = arith.addf %70, %76 : vector<24x256xf32>
    %78 = arith.addf %55, %77 : vector<24x256xf32>
    %cst_33 = arith.constant 0.000000e+00 : f32
    %79 = vector.broadcast %cst_33 : f32 to vector<24x256xf32>
    %c0_34 = arith.constant 0 : index
    %c2 = arith.constant 2 : index
    %80 = vector.load %arg14[%c0_34, %c2] : memref<24x290xf32, #tpu.memory_space<vmem>>, vector<24x256xf32>
    %81 = vector.extract_strided_slice %16 {offsets = [0, 0, 2], sizes = [24, 1, 1], strides = [1, 1, 1]} : vector<24x3x3xf32> to vector<24x1x1xf32>
    %82 = vector.shape_cast %81 : vector<24x1x1xf32> to vector<24xf32>
    %83 = vector.shape_cast %82 : vector<24xf32> to vector<24x1xf32>
    %84 = vector.broadcast %83 : vector<24x1xf32> to vector<24x256xf32>
    %85 = arith.mulf %80, %84 : vector<24x256xf32>
    %86 = arith.addf %79, %85 : vector<24x256xf32>
    %c0_35 = arith.constant 0 : index
    %c18 = arith.constant 18 : index
    %87 = vector.load %arg14[%c0_35, %c18] : memref<24x290xf32, #tpu.memory_space<vmem>>, vector<24x256xf32>
    %88 = vector.extract_strided_slice %16 {offsets = [0, 1, 2], sizes = [24, 1, 1], strides = [1, 1, 1]} : vector<24x3x3xf32> to vector<24x1x1xf32>
    %89 = vector.shape_cast %88 : vector<24x1x1xf32> to vector<24xf32>
    %90 = vector.shape_cast %89 : vector<24xf32> to vector<24x1xf32>
    %91 = vector.broadcast %90 : vector<24x1xf32> to vector<24x256xf32>
    %92 = arith.mulf %87, %91 : vector<24x256xf32>
    %93 = arith.addf %86, %92 : vector<24x256xf32>
    %c0_36 = arith.constant 0 : index
    %c34 = arith.constant 34 : index
    %94 = vector.load %arg14[%c0_36, %c34] : memref<24x290xf32, #tpu.memory_space<vmem>>, vector<24x256xf32>
    %95 = vector.extract_strided_slice %16 {offsets = [0, 2, 2], sizes = [24, 1, 1], strides = [1, 1, 1]} : vector<24x3x3xf32> to vector<24x1x1xf32>
    %96 = vector.shape_cast %95 : vector<24x1x1xf32> to vector<24xf32>
    %97 = vector.shape_cast %96 : vector<24xf32> to vector<24x1xf32>
    %98 = vector.broadcast %97 : vector<24x1xf32> to vector<24x256xf32>
    %99 = arith.mulf %94, %98 : vector<24x256xf32>
    %100 = arith.addf %93, %99 : vector<24x256xf32>
    %c1_i32 = arith.constant 1 : i32
    %101 = vector.broadcast %c1_i32 : i32 to vector<1x256xi32>
    %102 = arith.addi %17, %101 : vector<1x256xi32>
    %c0_i32_37 = arith.constant 0 : i32
    %103 = vector.broadcast %c0_i32_37 : i32 to vector<1x256xi32>
    %104 = arith.cmpi sge, %102, %103 : vector<1x256xi32>
    %c1_i32_38 = arith.constant 1 : i32
    %105 = vector.broadcast %c1_i32_38 : i32 to vector<1x256xi32>
    %106 = arith.addi %17, %105 : vector<1x256xi32>
    %c16_i32_39 = arith.constant 16 : i32
    %107 = vector.broadcast %c16_i32_39 : i32 to vector<1x256xi32>
    %108 = arith.cmpi slt, %106, %107 : vector<1x256xi32>
    %109 = arith.andi %104, %108 : vector<1x256xi1>
    %cst_40 = arith.constant 1.000000e+00 : f32
    %cst_41 = arith.constant 0.000000e+00 : f32
    %110 = vector.broadcast %cst_40 : f32 to vector<1x256xf32>
    %111 = vector.broadcast %cst_41 : f32 to vector<1x256xf32>
    %112 = arith.select %109, %110, %111 : vector<1x256xi1>, vector<1x256xf32>
    %113 = vector.broadcast %112 : vector<1x256xf32> to vector<24x256xf32>
    %114 = arith.mulf %100, %113 : vector<24x256xf32>
    %115 = arith.addf %78, %114 : vector<24x256xf32>
    %c0_42 = arith.constant 0 : index
    %c0_43 = arith.constant 0 : index
    %116 = vector.load %arg5[%c0_42, %c0_43] : memref<24x1xf32, #tpu.memory_space<vmem>>, vector<24x1xf32>
    %117 = vector.broadcast %116 : vector<24x1xf32> to vector<24x256xf32>
    %118 = arith.addf %115, %117 : vector<24x256xf32>
    %cst_44 = arith.constant 0.000000e+00 : f32
    %cst_45 = arith.constant 6.000000e+00 : f32
    %119 = vector.broadcast %cst_44 : f32 to vector<24x256xf32>
    %120 = arith.maximumf %119, %118 : vector<24x256xf32>
    %121 = vector.broadcast %cst_45 : f32 to vector<24x256xf32>
    %122 = arith.minimumf %121, %120 : vector<24x256xf32>
    %cst_46 = arith.constant dense<0.000000e+00> : vector<24xf32>
    %123 = vector.multi_reduction <add>, %122, %cst_46 [1] : vector<24x256xf32> to vector<24xf32>
    %124 = vector.shape_cast %123 : vector<24xf32> to vector<24x1xf32>
    %cst_47 = arith.constant 3.906250e-03 : f32
    %125 = vector.broadcast %cst_47 : f32 to vector<24x1xf32>
    %126 = arith.mulf %124, %125 : vector<24x1xf32>
    %c0_48 = arith.constant 0 : index
    %c0_49 = arith.constant 0 : index
    %127 = vector.load %arg7[%c0_48, %c0_49] : memref<16x24xf32, #tpu.memory_space<vmem>>, vector<16x24xf32>
    %cst_50 = arith.constant dense<0.000000e+00> : vector<16x1xf32>
    %128 = tpu.matmul %127, %126, %cst_50 {dimension_numbers = #tpu.dot_dimension_numbers<[1], [0], [0], [1], [0, 0, 1, 1], [], []>} : vector<16x24xf32>, vector<24x1xf32>, vector<16x1xf32> -> vector<16x1xf32>
    %c0_51 = arith.constant 0 : index
    %c0_52 = arith.constant 0 : index
    %129 = vector.load %arg8[%c0_51, %c0_52] : memref<16x1xf32, #tpu.memory_space<vmem>>, vector<16x1xf32>
    %130 = arith.addf %128, %129 : vector<16x1xf32>
    %cst_53 = arith.constant 0.000000e+00 : f32
    %131 = vector.broadcast %cst_53 : f32 to vector<16x1xf32>
    %132 = arith.maximumf %130, %131 : vector<16x1xf32>
    %c0_54 = arith.constant 0 : index
    %c0_55 = arith.constant 0 : index
    %133 = vector.load %arg9[%c0_54, %c0_55] : memref<24x16xf32, #tpu.memory_space<vmem>>, vector<24x16xf32>
    %cst_56 = arith.constant dense<0.000000e+00> : vector<24x1xf32>
    %134 = tpu.matmul %133, %132, %cst_56 {dimension_numbers = #tpu.dot_dimension_numbers<[1], [0], [0], [1], [0, 0, 1, 1], [], []>} : vector<24x16xf32>, vector<16x1xf32>, vector<24x1xf32> -> vector<24x1xf32>
    %c0_57 = arith.constant 0 : index
    %c0_58 = arith.constant 0 : index
    %135 = vector.load %arg10[%c0_57, %c0_58] : memref<24x1xf32, #tpu.memory_space<vmem>>, vector<24x1xf32>
    %136 = arith.addf %134, %135 : vector<24x1xf32>
    %cst_59 = arith.constant 0.166666672 : f32
    %137 = vector.broadcast %cst_59 : f32 to vector<24x1xf32>
    %138 = arith.mulf %136, %137 : vector<24x1xf32>
    %cst_60 = arith.constant 5.000000e-01 : f32
    %139 = vector.broadcast %cst_60 : f32 to vector<24x1xf32>
    %140 = arith.addf %138, %139 : vector<24x1xf32>
    %cst_61 = arith.constant 0.000000e+00 : f32
    %cst_62 = arith.constant 1.000000e+00 : f32
    %141 = vector.broadcast %cst_61 : f32 to vector<24x1xf32>
    %142 = arith.maximumf %141, %140 : vector<24x1xf32>
    %143 = vector.broadcast %cst_62 : f32 to vector<24x1xf32>
    %144 = arith.minimumf %143, %142 : vector<24x1xf32>
    %145 = vector.broadcast %144 : vector<24x1xf32> to vector<24x256xf32>
    %146 = arith.mulf %122, %145 : vector<24x256xf32>
    %c0_63 = arith.constant 0 : index
    %c0_64 = arith.constant 0 : index
    %147 = vector.load %arg11[%c0_63, %c0_64] : memref<4x24xf32, #tpu.memory_space<vmem>>, vector<4x24xf32>
    %cst_65 = arith.constant dense<0.000000e+00> : vector<4x256xf32>
    %148 = tpu.matmul %147, %146, %cst_65 {dimension_numbers = #tpu.dot_dimension_numbers<[1], [0], [0], [1], [0, 0, 1, 1], [], []>} : vector<4x24xf32>, vector<24x256xf32>, vector<4x256xf32> -> vector<4x256xf32>
    %c0_66 = arith.constant 0 : index
    %c0_67 = arith.constant 0 : index
    %149 = vector.load %arg12[%c0_66, %c0_67] : memref<4x1xf32, #tpu.memory_space<vmem>>, vector<4x1xf32>
    %150 = vector.broadcast %149 : vector<4x1xf32> to vector<4x256xf32>
    %151 = arith.addf %148, %150 : vector<4x256xf32>
    %c0_68 = arith.constant 0 : index
    %c0_69 = arith.constant 0 : index
    %c0_70 = arith.constant 0 : index
    %152 = vector.load %arg13[%c0_68, %c0_69, %c0_70] : memref<1x4x256xf32, #tpu.memory_space<vmem>>, vector<1x4x256xf32>
    %153 = vector.shape_cast %152 : vector<1x4x256xf32> to vector<4x256xf32>
    %154 = vector.shape_cast %151 : vector<4x256xf32> to vector<1x4x256xf32>
    tpu.vector_store %arg13[%c0_68, %c0_69, %c0_70], %154 {strides = array<i32>} : memref<1x4x256xf32, #tpu.memory_space<vmem>>, vector<1x4x256xf32>,
    return
  }
  func.func @transform_0(%arg0: i32) -> (i32, i32, i32) {
    %c0_i32 = arith.constant 0 : i32
    %c0_i32_0 = arith.constant 0 : i32
    %c0_i32_1 = arith.constant 0 : i32
    return %arg0, %c0_i32, %c0_i32_0 : i32, i32, i32
  }
  func.func @transform_1(%arg0: i32) -> (i32, i32) {
    %c0_i32 = arith.constant 0 : i32
    %c0_i32_0 = arith.constant 0 : i32
    %c0_i32_1 = arith.constant 0 : i32
    return %c0_i32, %c0_i32_0 : i32, i32
  }
  func.func @transform_2(%arg0: i32) -> (i32, i32) {
    %c0_i32 = arith.constant 0 : i32
    %c0_i32_0 = arith.constant 0 : i32
    %c0_i32_1 = arith.constant 0 : i32
    return %c0_i32, %c0_i32_0 : i32, i32
  }
  func.func @transform_3(%arg0: i32) -> (i32, i32, i32) {
    %c0_i32 = arith.constant 0 : i32
    %c0_i32_0 = arith.constant 0 : i32
    %c0_i32_1 = arith.constant 0 : i32
    %c0_i32_2 = arith.constant 0 : i32
    return %c0_i32, %c0_i32_0, %c0_i32_1 : i32, i32, i32
  }
  func.func @transform_4(%arg0: i32) -> (i32, i32) {
    %c0_i32 = arith.constant 0 : i32
    %c0_i32_0 = arith.constant 0 : i32
    %c0_i32_1 = arith.constant 0 : i32
    return %c0_i32, %c0_i32_0 : i32, i32
  }
  func.func @transform_5(%arg0: i32) -> (i32, i32) {
    %c0_i32 = arith.constant 0 : i32
    %c0_i32_0 = arith.constant 0 : i32
    %c0_i32_1 = arith.constant 0 : i32
    return %c0_i32, %c0_i32_0 : i32, i32
  }
  func.func @transform_6(%arg0: i32) -> (i32, i32) {
    %c0_i32 = arith.constant 0 : i32
    %c0_i32_0 = arith.constant 0 : i32
    %c0_i32_1 = arith.constant 0 : i32
    return %c0_i32, %c0_i32_0 : i32, i32
  }
  func.func @transform_7(%arg0: i32) -> (i32, i32) {
    %c0_i32 = arith.constant 0 : i32
    %c0_i32_0 = arith.constant 0 : i32
    %c0_i32_1 = arith.constant 0 : i32
    return %c0_i32, %c0_i32_0 : i32, i32
  }
  func.func @transform_8(%arg0: i32) -> (i32, i32) {
    %c0_i32 = arith.constant 0 : i32
    %c0_i32_0 = arith.constant 0 : i32
    %c0_i32_1 = arith.constant 0 : i32
    return %c0_i32, %c0_i32_0 : i32, i32
  }
  func.func @transform_9(%arg0: i32) -> (i32, i32) {
    %c0_i32 = arith.constant 0 : i32
    %c0_i32_0 = arith.constant 0 : i32
    %c0_i32_1 = arith.constant 0 : i32
    return %c0_i32, %c0_i32_0 : i32, i32
  }
  func.func @transform_10(%arg0: i32) -> (i32, i32) {
    %c0_i32 = arith.constant 0 : i32
    %c0_i32_0 = arith.constant 0 : i32
    %c0_i32_1 = arith.constant 0 : i32
    return %c0_i32, %c0_i32_0 : i32, i32
  }
  func.func @transform_11(%arg0: i32) -> (i32, i32) {
    %c0_i32 = arith.constant 0 : i32
    %c0_i32_0 = arith.constant 0 : i32
    %c0_i32_1 = arith.constant 0 : i32
    return %c0_i32, %c0_i32_0 : i32, i32
  }
  func.func @transform_12(%arg0: i32) -> (i32, i32, i32) {
    %c0_i32 = arith.constant 0 : i32
    %c0_i32_0 = arith.constant 0 : i32
    %c0_i32_1 = arith.constant 0 : i32
    return %arg0, %c0_i32, %c0_i32_0 : i32, i32, i32
  }
}

</mosaic_0001>

<bundles_post_ra>
// kernel: tpu_custom_call.1
= control target key start
LH: loop header
LB: loop body
LE: loop exit
PB: predicated region body
PF: predicated region fallthrough
CT: control target
= control target key end

     0   :  { %s3859_s0 = inlined_call_operand.vmem [shape: f32[2,4,256], index: 0, kind: input, shape index: {}]   ;;  %s3860_s1 = inlined_call_operand.vmem [shape: f32[24,4], index: 1, kind: input, shape index: {}]   ;;  %s3861_s2 = inlined_call_operand.vmem [shape: f32[24,1], index: 2, kind: input, shape index: {}]   ;;  %s3862_s3 = inlined_call_operand.vmem [shape: f32[24,3,3], index: 3, kind: input, shape index: {}]   ;;  %s3863_s4 = inlined_call_operand.vmem [shape: f32[24,1], index: 4, kind: input, shape index: {}]   ;;  %s3864_s5 = inlined_call_operand.vmem [shape: s32[1,256], index: 5, kind: input, shape index: {}]   ;;  %s3865_s6 = inlined_call_operand.vmem [shape: f32[16,24], index: 6, kind: input, shape index: {}]   ;;  %s3866_s7 = inlined_call_operand.vmem [shape: f32[16,1], index: 7, kind: input, shape index: {}]   ;;  %s3867_s8 = inlined_call_operand.vmem [shape: f32[24,16], index: 8, kind: input, shape index: {}]   ;;  %s3868_s9 = inlined_call_operand.vmem [shape: f32[24,1], index: 9, kind: input, shape index: {}]   ;;  %s3869_s10 = inlined_call_operand.vmem [shape: f32[4,24], index: 10, kind: input, shape index: {}]   ;;  %s3870_s11 = inlined_call_operand.vmem [shape: f32[4,1], index: 11, kind: input, shape index: {}]   ;;  %s3871_s12 = inlined_call_operand.hbm [shape: f32[2,4,256], index: 12, kind: output, shape index: {}]  }
   0x1   :  { %3935 = sst [smem:[#allocation55_spill]] %s3859_s0 }
   0x2   :  { %3936 = sst [smem:[#allocation56_spill]] %s3860_s1 }
   0x3   :  { %17 = vsyncpa [#allocation4], 0 }
   0x4   :  { %19 = vsyncpa [#allocation4 + $0x1], 0  ;;  %s2551_s21 = smov 0   ;;  %s2553_s22 = smov 0  }
   0x5   :  { %s2555_s23 = smov 0   ;;  %s2557_s24 = smov 0  }
   0x6 LB: > { %s2572_s25 = sadd.s32 4294967295, %s2471_s24   ;;  %s2261_s26 = sadd.s32 4294967294, %s2471_s24   ;;  %s2471_s24 = sphi %s2557_s24, %s4063_s24   ;;  %s2467_s23 = sphi %s2555_s23, %s4062_s23   ;;  %s2463_s22 = sphi %s2553_s22, %s4061_s22   ;;  %s2459_s21 = sphi %s2551_s21, %s4060_s21  }
   0x7   : > { %s2576_s27 = sadd.s32 1, %s2471_s24   ;;  %s289_s28 = sadd.s32 1, %s2467_s23 }
   0x8   : > { %s286_s29 = ssub.s32 %s2471_s24, %s2576_s27  ;;  %p299_p0 = scmp.ne.s32.totalorder %s2467_s23, %s2463_s22 }
   0x9   : > { %p287_p1 = scmp.eq.s32.totalorder %s286_s29, 0  ;;  %p300_p2 = scmp.eq.s32.totalorder %s2572_s25, 1 }
   0xa   : > { %p305_p3 = scmp.ne.s32.totalorder %s2463_s22, %s2459_s21  ;;  %p306_p4 = scmp.eq.s32.totalorder %s2261_s26, 1 }
   0xb   : > { %s2587_s30 = scalar_select %p287_p1, %s2467_s23, %s289_s28  }
   0xc   : > { %p2589_p5 = por %p300_p2, %p299_p0  ;;  %p2593_p6 = por %p306_p4, %p305_p3 }
   0xd   : > { %p2264_p7 = scmp.ge.s32.totalorder %s2471_s24, 1  ;;  %p365_p8 = scmp.lt.s32.totalorder %s2471_s24, 3 }
   0xf   : > { %p366_p9 = pnand %p2264_p7, %p365_p8 }
  0x11   : > { %369 = sbr.rel (%p366_p9) target bundleno = 1679 (0x68f), region = 68 }
  0x18   : > { %v2602_v0 = vld [vmem:[%s3862_s3 + $0x8] sm:$0x7]  ;;  %v426_v1 = vld [vmem:[%s3861_s2 + $0x10] sm:$0xff]  ;;  %v2473_v2 = vmov 2   ;;  %v2474_v3 = vmov 0   ;;  %p407_p10 = scmp.lt.s32.totalorder %s2572_s25, 1  ;;  %v1000_v57 = vlaneseq }
  0x19   : > { %2384 = vset.pattern.permute.xlu0 %v2473_v2  ;;  %2380 = vset.pattern.permute.xlu1 %v2474_v3  ;;  %v2614_v4 = vld [vmem:[%s3862_s3 + $0x4] sm:$0x7]  ;;  %v3874_v5 = vmov 0.0   ;;  %v2621_v6 = vld [vmem:[%s3862_s3] sm:$0x7]  ;;  %v2476_v7 = vmov 1  }
  0x1a   : > { %1420 = vperm.xlu0 %2384, %v2602_v0   ;;  %439 = vperm.xlu1 %2380, %v426_v1   ;;  %s408_s26 = scalar_select %p407_p10, %s2572_s25, 1  ;;  %vm454_vm0 = vcmask 1043456   ;;  %v2632_v9 = vld [vmem:[%s3862_s3 + $0x2c] sm:$0x7]  ;;  %vm444_vm1 = vcmask 31744   ;;  %v424_v33 = vld [vmem:[%s3861_s2] sm:$0xff] }
  0x1b   : > { %523 = vmatprep.mubr.f32.mxu0 %v3874_v5  ;;  %s3939_s0 = sld [smem:[#allocation55_spill]]  ;;  %s3940_s1 = sld [smem:[#allocation56_spill]]  ;;  %v2642_v12 = vld [vmem:[%s3862_s3 + $0x14] sm:$0x7]  ;;  %v2653_v14 = vld [vmem:[%s3862_s3 + $0x20] sm:$0x7] }
  0x1c   : > { %s2284_s15 = sshll.u32 %s408_s26, 3  ;;  %v2659_v15 = vld [vmem:[%s3862_s3 + $0x3c] sm:$0x7]  ;;  %v2671_v17 = vld [vmem:[%s3862_s3 + $0x28] sm:$0x7]  ;;  %v2845_v60 = vshrl.u32 %v1000_v57, 7 }
  0x1d   : > { %v2676_v18 = vld [vmem:[%s3862_s3 + $0x48] sm:$0x7]  ;;  %v597_v19 = vld [vmem:[%s3862_s3 + $0xc] sm:$0x7]  ;;  %v2696_v20 = vld [vmem:[%s3862_s3 + $0x24] sm:$0x7] }
  0x1e   : > { %1417 = vperm.xlu0 %2384, %v2614_v4   ;;  %2381 = vset.pattern.permute.xlu1 %v2476_v7  ;;  %v606_v21 = vld [vmem:[%s3862_s3 + $0x30] sm:$0x7]  ;;  %v608_v22 = vld [vmem:[%s3862_s3 + $0x38] sm:$0x7]  ;;  %v2712_v23 = vld [vmem:[%s3862_s3 + $0x1c] sm:$0x7] }
  0x1f   : > { %1023 = vperm.xlu1 %2381, %v2621_v6   ;;  %v2717_v24 = vld [vmem:[%s3862_s3 + $0x10] sm:$0x7]  ;;  %v2724_v25 = vld [vmem:[%s3862_s3 + $0x40] sm:$0x7]  ;;  %v613_v26 = vld [vmem:[%s3862_s3 + $0x4c] sm:$0x7] }
  0x20   : > { %v2736_v27 = vld [vmem:[%s3862_s3 + $0x50] sm:$0x7]  ;;  %v615_v28 = vld [vmem:[%s3862_s3 + $0x54] sm:$0x7]  ;;  %v2749_v30 = vld [vmem:[%s3862_s3 + $0x58] sm:$0x7] }
  0x21   : > { %s411_s18 = scalar_lea.vmem %s3939_s0, %s2284_s15  ;;  %v420_v11 = vld [vmem:[%s3940_s1] sm:$0xff]  ;;  %v421_v13 = vld [vmem:[%s3940_s1 + $0x8] sm:$0xff]  ;;  %v422_v16 = vld [vmem:[%s3940_s1 + $0x10] sm:$0xff]  ;;  %3950 = vst [vmem:[#allocation15_spill] sm:$0xff] %v2845_v60  ;;  %v3873_v63 = vsub.s32 0, %v2845_v60  ;;  %s2477_s19 = smov 2  }
  0x22   : > { %v423_v8 = vld [vmem:[%s411_s18] sm:$0xff]  ;;  %1447 = vperm.xlu0 %2384, %v2632_v9   ;;  %v607_v29 = vld [vmem:[%s3862_s3 + $0x34] sm:$0x7]  ;;  %v617_v31 = vld [vmem:[%s3862_s3 + $0x5c] sm:$0x7]  ;;  %vm412_vm5 = vcmask 138240  }
  0x23   : > { %v443_v10 = vcombine.high %v423_v8, %v423_v8  ;;  %2382 = vset.pattern.permute.xlu1 %v2473_v2  ;;  %v2759_v32 = vld [vmem:[%s3862_s3 + $0x18] sm:$0x7]  ;;  %v425_v34 = vld [vmem:[%s3861_s2 + $0x8] sm:$0xff]  ;;  %v611_v35 = vld [vmem:[%s3862_s3 + $0x44] sm:$0x7]  ;;  %413 = vst.msk [vmem:[#allocation2] sm:$0xff] %vm412_vm5, %v3874_v5 }
  0x24   : > { %1414 = vperm.xlu1 %2382, %v2621_v6   ;;  %v618_v53 = vld [vmem:[%s3864_s5] sm:$0x3]  ;;  %414 = vst.msk [vmem:[#allocation2 + $0x18] sm:$0xff] %vm412_vm5, %v3874_v5  ;;  %415 = vst.msk [vmem:[#allocation2 + $0x30] sm:$0xff] %vm412_vm5, %v3874_v5  ;;  %vm416_vm6 = vcmask 277640   ;;  %s2478_s20 = smov 17  }
  0x25   : > { %2268 = vmatprep.subr.msk.mxu0 %vm454_vm0, %v443_v10  ;;  %v1758_v56 = vadd.s32 1, %v618_v53  ;;  %417 = vst.msk [vmem:[#allocation2 + $0x10] sm:$0xff] %vm416_vm6, %v3874_v5  ;;  %418 = vst.msk [vmem:[#allocation2 + $0x28] sm:$0xff] %vm416_vm6, %v3874_v5  ;;  %vm722_vm7 = vcmask 1041409   ;;  %vm725_vm8 = vcmask 1042434   ;;  %vm728_vm9 = vcmask 1043459  }
  0x26   : > { %2269 = vmatpush1.msk.msra.mxu0 %vm454_vm0, %v423_v8  ;;  %1429 = vperm.xlu0 %2384, %v2642_v12   ;;  %419 = vst.msk [vmem:[#allocation2 + $0x40] sm:$0xff] %vm416_vm6, %v3874_v5  ;;  %vm731_vm10 = vcmask 1044484   ;;  %vm734_vm11 = vcmask 1045509   ;;  %vm737_vm12 = vcmask 1046534   ;;  %vm740_vm13 = vcmask 1047559   ;;  %s2479_s26 = smov 112  }
  0x27   : > { %2270 = vmatmul.mubr.msk.f32.vlgmr.msra.gmra.mrb[0].mxu0 %vm444_vm1, %v420_v11  ;;  %vm1759_vm2 = vcmp.ge.s32.totalorder %v1758_v56, 0  ;;  %vm1760_vm3 = vcmp.lt.s32.totalorder %v1758_v56, 16  ;;  %vm584_vm14 = vcmask 1047688   ;;  %s2480_s28 = smov 96   ;;  %vm875_vm15 = vcmask 916480   ;;  %s2285_s29 = sshll.u32 %s2572_s25, 7 }
  0x28   : > { %529 = vmatprep.mubr.f32.mxu0 %v3874_v5  ;;  %1438 = vperm.xlu1 %2382, %v2653_v14   ;;  %vm1761_vm4 = vmand %vm1759_vm2, %vm1760_vm3  ;;  %vm975_vm0 = vcmask 785408   ;;  %vm1817_vm6 = vcmask 1031168   ;;  %s2485_s25 = smov [#allocation3]  }
  0x29   : > { %v1762_v1 = vsel %vm1761_vm4, 1.0, %v3874_v5 }
  0x2a   : > { %1459 = vperm.xlu0 %2384, %v2659_v15  }
  0x2b   : > { %2271 = vmatmul.mubr.msk.f32.gmra.mrb[2].mxu0 %vm444_vm1, %v421_v13 }
  0x2c   : > { %535 = vmatprep.mubr.f32.mxu0 %v3874_v5  ;;  %2383 = vset.pattern.permute.xlu1 %v2476_v7 }
  0x2d   : > { %1053 = vperm.xlu1 %2383, %v2671_v17  }
  0x2e   : > { %1468 = vperm.xlu0 %2384, %v2676_v18  }
  0x2f   : > { %2272 = vmatmul.mubr.msk.f32.gmra.mrb[4].mxu0 %vm444_vm1, %v422_v16  ;;  %vm1776_vm1 = vcmask 15360  }
  0x30   : > { %2175 = vmatprep.mubr.f32.mxu0 %v3874_v5 }
  0x31   : > { %2385 = vset.pattern.permute.xlu1 %v2473_v2 }
  0x32   : > { %2397 = vset.pattern.permute.xlu0 %v2476_v7  ;;  %1444 = vperm.xlu1 %2385, %v2671_v17  }
  0x33   : > { %1047 = vperm.xlu0 %2397, %v2653_v14  }
  0x36   : > { %2386 = vset.pattern.permute.xlu1 %v2476_v7 }
  0x37   : > { %1029 = vperm.xlu0 %2397, %v2602_v0   ;;  %1026 = vperm.xlu1 %2386, %v2614_v4  }
  0x3b   : > { %1032 = vperm.xlu0 %2397, %v597_v19   ;;  %1050 = vperm.xlu1 %2386, %v2696_v20  }
  0x3f   : > { %1059 = vperm.xlu0 %2397, %v606_v21   ;;  %1056 = vperm.xlu1 %2386, %v2632_v9  }
  0x43   : > { %1038 = vperm.xlu0 %2397, %v2642_v12   ;;  %2387 = vset.pattern.permute.xlu1 %v2473_v2 }
  0x44   : > { %1423 = vperm.xlu1 %2387, %v597_v19  }
  0x47   : > { %1065 = vperm.xlu0 %2397, %v608_v22  }
  0x48   : > { %1441 = vperm.xlu1 %2387, %v2696_v20  }
  0x4b   : > { %1044 = vperm.xlu0 %2397, %v2712_v23  }
  0x4c   : > { %2388 = vset.pattern.permute.xlu1 %v2476_v7 }
  0x4d   : > { %1035 = vperm.xlu1 %2388, %v2717_v24  }
  0x4f   : > { %1071 = vperm.xlu0 %2397, %v2724_v25  }
  0x51   : > { %2389 = vset.pattern.permute.xlu1 %v2473_v2 }
  0x52   : > { %1426 = vperm.xlu1 %2389, %v2717_v24  }
  0x53   : > { %1080 = vperm.xlu0 %2397, %v613_v26  }
  0x56   : > { %1450 = vperm.xlu1 %2389, %v606_v21  }
  0x57   : > { %1083 = vperm.xlu0 %2397, %v2736_v27  }
  0x5a   : > { %2390 = vset.pattern.permute.xlu1 %v2476_v7 }
  0x5b   : > { %1086 = vperm.xlu0 %2397, %v615_v28   ;;  %1062 = vperm.xlu1 %2390, %v607_v29  }
  0x5f   : > { %1089 = vperm.xlu0 %2397, %v2749_v30   ;;  %2391 = vset.pattern.permute.xlu1 %v2473_v2 }
  0x60   : > { %1453 = vperm.xlu1 %2391, %v607_v29  }
  0x63   : > { %1092 = vperm.xlu0 %2397, %v617_v31  }
  0x64   : > { %2392 = vset.pattern.permute.xlu1 %v2476_v7 }
  0x65   : > { %1041 = vperm.xlu1 %2392, %v2759_v32  }
  0x67   : > { %2399 = vset.pattern.permute.xlu0 %v2474_v3 }
  0x68   : > { %429 = vperm.xlu0 %2399, %v424_v33  }
  0x69   : > { %2393 = vset.pattern.permute.xlu1 %v2473_v2 }
  0x6a   : > { %1432 = vperm.xlu1 %2393, %v2759_v32  }
  0x6c   : > { %434 = vperm.xlu0 %2399, %v425_v34  }
  0x6e   : > { %1456 = vperm.xlu1 %2393, %v608_v22  }
  0x70   : > { %627 = vperm.xlu0 %2399, %v2621_v6  }
  0x72   : > { %2394 = vset.pattern.permute.xlu1 %v2476_v7 }
  0x73   : > { %1068 = vperm.xlu1 %2394, %v2659_v15  }
  0x74   : > { %667 = vperm.xlu0 %2399, %v2671_v17  }
  0x77   : > { %2395 = vset.pattern.permute.xlu1 %v2473_v2 }
  0x78   : > { %1435 = vperm.xlu1 %2395, %v2712_v23   ;;  %639 = vperm.xlu0 %2399, %v597_v19  }
  0x7c   : > { %1462 = vperm.xlu1 %2395, %v2724_v25   ;;  %671 = vperm.xlu0 %2399, %v2632_v9  }
  0x80   : > { %2396 = vset.pattern.permute.xlu1 %v2476_v7  ;;  %675 = vperm.xlu0 %2399, %v606_v21  }
  0x81   : > { %1077 = vperm.xlu1 %2396, %v2676_v18  }
  0x84   : > { %679 = vperm.xlu0 %2399, %v607_v29  }
  0x85   : > { %1074 = vperm.xlu1 %2396, %v611_v35  }
  0x88   : > { %683 = vperm.xlu0 %2399, %v608_v22  }
  0x89   : > { %2398 = vset.pattern.permute.xlu1 %v2473_v2 }
  0x8a   : > { %1465 = vperm.xlu1 %2398, %v611_v35  }
  0x8c   : > { %687 = vperm.xlu0 %2399, %v2659_v15  }
  0x8e   : > { %1471 = vperm.xlu1 %2398, %v613_v26  }
  0x90   : > { %699 = vperm.xlu0 %2399, %v2676_v18  }
  0x92   : > { %1474 = vperm.xlu1 %2398, %v2736_v27  }
  0x94   : > { %703 = vperm.xlu0 %2399, %v613_v26  }
  0x96   : > { %1477 = vperm.xlu1 %2398, %v615_v28  }
  0x98   : > { %711 = vperm.xlu0 %2399, %v615_v28  }
  0x99   : > { %v2789_v36 = vpop.permute.xlu0 %1420  ;;  %v2791_v37 = vpop.permute.xlu1 %439 }
  0x9a   : > { %1480 = vperm.xlu1 %2398, %v2749_v30  }
  0x9c   : > { %719 = vperm.xlu0 %2399, %v617_v31  }
  0x9d   : > { %v2794_v38 = vpop.permute.xlu0 %1417 }
  0x9e   : > { %1483 = vperm.xlu1 %2398, %v617_v31   ;;  %v2796_v39 = vpop.permute.xlu1 %1023 }
  0xa1   : > { %v2798_v40 = vpop.permute.xlu0 %1447 }
  0xa2   : > { %2400 = vset.pattern.permute.xlu1 %v2474_v3  ;;  %v1767_v3 = vrot.slane %v1762_v1, %v3873_v63 }
  0xa3   : > { %659 = vperm.xlu1 %2400, %v2653_v14   ;;  %v2802_v41 = vpop.permute.xlu1 %1414 }
  0xa4   : > { %3941 = vst [vmem:[#allocation6_spill] sm:$0xff] %v2802_v41 }
  0xa5   : > { %v2804_v42 = vpop.permute.xlu0 %1429 }
  0xa6   : > { %3942 = vst [vmem:[#allocation7_spill] sm:$0xff] %v2804_v42 }
  0xa7   : > { %635 = vperm.xlu1 %2400, %v2602_v0   ;;  %v2807_v43 = vpop.permute.xlu1 %1438  ;;  %v3872_v0 = vsub.s32 1, %v2845_v60 }
  0xa8   : > { %3943 = vst [vmem:[#allocation8_spill] sm:$0xff] %v2807_v43 }
  0xa9   : > { %v2809_v44 = vpop.permute.xlu0 %1459 }
  0xaa   : > { %3944 = vst [vmem:[#allocation9_spill] sm:$0xff] %v2809_v44 }
  0xab   : > { %631 = vperm.xlu1 %2400, %v2614_v4   ;;  %v1771_v4 = vrot.slane %v1762_v1, %v3872_v0 }
  0xac   : > { %v2812_v45 = vpop.permute.xlu1 %1053 }
  0xad   : > { %3945 = vst [vmem:[#allocation10_spill] sm:$0xff] %v2812_v45  ;;  %v2814_v46 = vpop.permute.xlu0 %1468  ;;  %v2401_v7 = vpack.i.bf16 %v1771_v4, %v1767_v3 }
  0xae   : > { %3946 = vst [vmem:[#allocation11_spill] sm:$0xff] %v2814_v46 }
  0xaf   : > { %663 = vperm.xlu1 %2400, %v2696_v20  }
  0xb1   : > { %v2817_v47 = vpop.permute.xlu1 %1444 }
  0xb2   : > { %v2819_v48 = vpop.permute.xlu0 %1047 }
  0xb3   : > { %3947 = vst [vmem:[#allocation12_spill] sm:$0xff] %v2819_v48  ;;  %643 = vperm.xlu1 %2400, %v2717_v24  }
  0xb6   : > { %v2822_v49 = vpop.permute.xlu0 %1029  ;;  %v2824_v50 = vpop.permute.xlu1 %1026 }
  0xb7   : > { %647 = vperm.xlu1 %2400, %v2642_v12  }
  0xba   : > { %v2827_v51 = vpop.permute.xlu0 %1032  ;;  %v2829_v52 = vpop.permute.xlu1 %1050 }
  0xbb   : > { %3948 = vst [vmem:[#allocation13_spill] sm:$0xff] %v2829_v52  ;;  %651 = vperm.xlu1 %2400, %v2759_v32  }
  0xbe   : > { %v2835_v54 = vpop.permute.xlu0 %1059  ;;  %v2837_v55 = vpop.permute.xlu1 %1056 }
  0xbf   : > { %3949 = vst [vmem:[#allocation14_spill] sm:$0xff] %v2837_v55  ;;  %655 = vperm.xlu1 %2400, %v2712_v23  }
  0xc2   : > { %v2840_v58 = vpop.permute.xlu0 %1038 }
  0xc3   : > { %691 = vperm.xlu1 %2400, %v2724_v25   ;;  %v2843_v59 = vpop.permute.xlu1 %1423 }
  0xc6   : > { %v2847_v61 = vpop.permute.xlu0 %1065 }
  0xc7   : > { %3951 = vst [vmem:[#allocation16_spill] sm:$0xff] %v2847_v61  ;;  %695 = vperm.xlu1 %2400, %v611_v35   ;;  %v2849_v62 = vpop.permute.xlu1 %1441 }
  0xc8   : > { %3952 = vst [vmem:[#allocation17_spill] sm:$0xff] %v2849_v62 }
  0xca   : > { %v2854_v2 = vpop.permute.xlu0 %1044 }
  0xcb   : > { %3953 = vst [vmem:[#allocation18_spill] sm:$0xff] %v2854_v2  ;;  %707 = vperm.xlu1 %2400, %v2736_v27  }
  0xcc   : > { %v2861_v6 = vpop.permute.xlu1 %1035 }
  0xcd   : > { %3954 = vst [vmem:[#allocation19_spill] sm:$0xff] %v2861_v6 }
  0xce   : > { %v2864_v8 = vpop.permute.xlu0 %1071 }
  0xcf   : > { %715 = vperm.xlu1 %2400, %v2749_v30   ;;  %3955 = vst [vmem:[#allocation20_spill] sm:$0xff] %v2864_v8 }
  0xd1   : > { %v2866_v9 = vpop.permute.xlu1 %1426 }
  0xd2   : > { %v2876_v11 = vpop.permute.xlu0 %1080 }
  0xd3   : > { %2402 = vrot.lane.b32.xlu1 %v2401_v7, %s2477_s19  ;;  %3957 = vst [vmem:[#allocation22_spill] sm:$0xff] %v2876_v11  ;;  %s3817_s19 = scalar_lea.hbm %s3871_s12, %s2285_s29 }
  0xd5   : > { %v2874_v10 = vpop.permute.xlu1 %1450 }
  0xd6   : > { %3956 = vst [vmem:[#allocation21_spill] sm:$0xff] %v2874_v10  ;;  %v2880_v13 = vpop.permute.xlu0 %1083 }
  0xd7   : > { %3959 = vst [vmem:[#allocation24_spill] sm:$0xff] %v2880_v13 }
  0xda   : > { %v2878_v12 = vpop.permute.xlu1 %1062  ;;  %v2884_v15 = vpop.permute.xlu0 %1086 }
  0xdb   : > { %3958 = vst [vmem:[#allocation23_spill] sm:$0xff] %v2878_v12  ;;  %3961 = vst [vmem:[#allocation26_spill] sm:$0xff] %v2884_v15 }
  0xde   : > { %v2888_v17 = vpop.permute.xlu0 %1089 }
  0xdf   : > { %v2882_v14 = vpop.permute.xlu1 %1453  ;;  %3962 = vst [vmem:[#allocation27_spill] sm:$0xff] %v2888_v17 }
  0xe0   : > { %3960 = vst [vmem:[#allocation25_spill] sm:$0xff] %v2882_v14 }
  0xe2   : > { %v2894_v20 = vpop.permute.xlu0 %1092 }
  0xe3   : > { %3964 = vst [vmem:[#allocation29_spill] sm:$0xff] %v2894_v20 }
  0xe4   : > { %v2886_v16 = vpop.permute.xlu1 %1041 }
  0xe7   : > { %v430_v22 = vpop.permute.xlu0 %429 }
  0xe9   : > { %v2890_v18 = vpop.permute.xlu1 %1432 }
  0xeb   : > { %v435_v28 = vpop.permute.xlu0 %434 }
  0xed   : > { %v2892_v19 = vpop.permute.xlu1 %1456 }
  0xee   : > { %3963 = vst [vmem:[#allocation28_spill] sm:$0xff] %v2892_v19 }
  0xf2   : > { %v2896_v21 = vpop.permute.xlu1 %1068 }
  0xf3   : > { %3965 = vst [vmem:[#allocation30_spill] sm:$0xff] %v2896_v21 }
  0xf7   : > { %v2901_v24 = vpop.permute.xlu1 %1435 }
  0xf8   : > { %3966 = vst [vmem:[#allocation31_spill] sm:$0xff] %v2901_v24 }
  0xfa   : > { %v525_v23 = vpop.f32.mrb[0].mxu0 }
  0xfb   : > { %v526_v25 = vadd.f32 %v525_v23, %v430_v22  ;;  %v527_v26 = vpop.f32.mrb[1].mxu0  ;;  %v2903_v32 = vpop.permute.xlu1 %1462 }
  0xfc   : > { %v528_v27 = vadd.f32 %v527_v26, %v430_v22  ;;  %3967 = vst [vmem:[#allocation32_spill] sm:$0xff] %v2903_v32 }
  0xfd   : > { %v542_v29 = vmax.f32 %v526_v25, 0.0 }
  0xfe   : > { %v543_v30 = vmax.f32 %v528_v27, 0.0  ;;  %v531_v31 = vpop.f32.mrb[2].mxu0 }
  0xff   : > { %v548_v33 = vmin.f32 %v542_v29, 6.0  ;;  %v532_v34 = vadd.f32 %v531_v31, %v435_v28  ;;  %v533_v35 = vpop.f32.mrb[3].mxu0 }
 0x100   : > { %v549_v53 = vmin.f32 %v543_v30, 6.0  ;;  %v534_v57 = vadd.f32 %v533_v35, %v435_v28  ;;  %v2907_v25 = vpop.permute.xlu1 %1077 }
 0x101   : > { %v544_v56 = vmax.f32 %v532_v34, 0.0  ;;  %560 = vrot.lane.b32.xlu1 %v548_v33, %s2478_s20  ;;  %3968 = vst [vmem:[#allocation33_spill] sm:$0xff] %v2907_v25  ;;  %v2913_v34 = vpop.permute.xlu0 %627 }
 0x102   : > { %v537_v1 = vpop.f32.mrb[4].mxu0  ;;  %562 = vrot.lane.b32.xlu0 %v549_v53, %s2478_s20  ;;  %v545_v4 = vmax.f32 %v534_v57, 0.0  ;;  %3971 = vst [vmem:[#allocation36_spill] sm:$0xff] %v2913_v34 }
 0x103   : > { %v550_v3 = vmin.f32 %v544_v56, 6.0  ;;  %v538_v7 = vadd.f32 %v537_v1, %v2791_v37  ;;  %v539_v22 = vpop.f32.mrb[5].mxu0 }
 0x104   : > { %v540_v23 = vadd.f32 %v539_v22, %v2791_v37  ;;  %v551_v26 = vmin.f32 %v545_v4, 6.0  ;;  %v2909_v31 = vpop.permute.xlu1 %1074 }
 0x105   : > { %v546_v27 = vmax.f32 %v538_v7, 0.0  ;;  %564 = vrot.lane.b32.xlu1 %v550_v3, %s2478_s20  ;;  %3969 = vst [vmem:[#allocation34_spill] sm:$0xff] %v2909_v31  ;;  %v2919_v53 = vpop.permute.xlu0 %667 }
 0x106   : > { %v547_v29 = vmax.f32 %v540_v23, 0.0  ;;  %566 = vrot.lane.b32.xlu0 %v551_v26, %s2478_s20 }
 0x107   : > { %v552_v30 = vmin.f32 %v546_v27, 6.0 }
 0x108   : > { %v553_v28 = vmin.f32 %v547_v29, 6.0 }
 0x109   : > { %v2911_v33 = vpop.permute.xlu1 %1465  ;;  %v2923_v57 = vpop.permute.xlu0 %639 }
 0x10a   : > { %570 = vrot.lane.b32.xlu1 %v553_v28, %s2478_s20  ;;  %568 = vrot.lane.b32.xlu0 %v552_v30, %s2478_s20  ;;  %3970 = vst [vmem:[#allocation35_spill] sm:$0xff] %v2911_v33  ;;  %3975 = vst [vmem:[#allocation40_spill] sm:$0xff] %v2923_v57  ;;  %s2481_s20 = smov 127  }
 0x10d   : > { %v2915_v35 = vpop.permute.xlu1 %1471  ;;  %v2929_v4 = vpop.permute.xlu0 %671 }
 0x10e   : > { %3972 = vst [vmem:[#allocation37_spill] sm:$0xff] %v2915_v35 }
 0x111   : > { %v2917_v37 = vpop.permute.xlu1 %1474  ;;  %v2933_v22 = vpop.permute.xlu0 %675 }
 0x112   : > { %3973 = vst [vmem:[#allocation38_spill] sm:$0xff] %v2917_v37 }
 0x115   : > { %v2921_v56 = vpop.permute.xlu1 %1477  ;;  %v2939_v27 = vpop.permute.xlu0 %679 }
 0x116   : > { %3974 = vst [vmem:[#allocation39_spill] sm:$0xff] %v2921_v56 }
 0x119   : > { %v2925_v1 = vpop.permute.xlu1 %1480  ;;  %v2943_v30 = vpop.permute.xlu0 %683 }
 0x11a   : > { %3976 = vst [vmem:[#allocation41_spill] sm:$0xff] %v2925_v1 }
 0x11d   : > { %v2927_v3 = vpop.permute.xlu1 %1483  ;;  %v2949_v63 = vpop.permute.xlu0 %687 }
 0x11e   : > { %3977 = vst [vmem:[#allocation42_spill] sm:$0xff] %v2927_v3 }
 0x121   : > { %v700_v60 = vpop.permute.xlu0 %699 }
 0x122   : > { %v2931_v7 = vpop.permute.xlu1 %659  ;;  %v824_v56 = vrot.slane %v700_v60, 7  ;;  %v758_v11 = vrot.slane %v700_v60, 6 }
 0x125   : > { %v704_v3 = vpop.permute.xlu0 %703 }
 0x126   : > { %v2935_v23 = vpop.permute.xlu1 %635  ;;  %v826_v15 = vrot.slane %v704_v3, 6  ;;  %v760_v32 = vrot.slane %v704_v3, 5  ;;  %v926_v25 = vrot.slane %v704_v3, 7 }
 0x127   : > { %3978 = vst [vmem:[#allocation43_spill] sm:$0xff] %v2935_v23 }
 0x129   : > { %v712_v8 = vpop.permute.xlu0 %711 }
 0x12a   : > { %v2937_v26 = vpop.permute.xlu1 %631 }
 0x12b   : > { %3979 = vst [vmem:[#allocation44_spill] sm:$0xff] %v2937_v26 }
 0x12e   : > { %v2941_v29 = vpop.permute.xlu1 %663 }
 0x132   : > { %v2945_v28 = vpop.permute.xlu1 %643 }
 0x133   : > { %3980 = vst [vmem:[#allocation45_spill] sm:$0xff] %v2945_v28 }
 0x136   : > { %v2947_v0 = vpop.permute.xlu1 %647 }
 0x137   : > { %3981 = vst [vmem:[#allocation46_spill] sm:$0xff] %v2947_v0 }
 0x13a   : > { %v2951_v5 = vpop.permute.xlu1 %651 }
 0x13b   : > { %3982 = vst [vmem:[#allocation47_spill] sm:$0xff] %v2951_v5 }
 0x13e   : > { %v2953_v20 = vpop.permute.xlu1 %655 }
 0x13f   : > { %3983 = vst [vmem:[#allocation48_spill] sm:$0xff] %v2953_v20 }
 0x142   : > { %v692_v17 = vpop.permute.xlu1 %691 }
 0x143   : > { %v822_v1 = vrot.slane %v692_v17, 1  ;;  %v922_v13 = vrot.slane %v692_v17, 2 }
 0x146   : > { %v696_v37 = vpop.permute.xlu1 %695 }
 0x147   : > { %v756_v35 = vrot.slane %v696_v37, 7  ;;  %v823_v33 = vsel %vm722_vm7, %v696_v37, %v822_v1  ;;  %v923_v46 = vrot.slane %v696_v37, 1 }
 0x148   : > { %v825_v31 = vsel %vm725_vm8, %v824_v56, %v823_v33  ;;  %v764_v33 = vrot.slane %v712_v8, 3  ;;  %v830_v56 = vrot.slane %v712_v8, 4 }
 0x149   : > { %v757_v44 = vsel %vm722_vm7, %v756_v35, %v692_v17  ;;  %v827_v19 = vsel %vm728_vm9, %v826_v15, %v825_v31  ;;  %v924_v21 = vsel %vm722_vm7, %v923_v46, %v922_v13  ;;  %v930_v17 = vrot.slane %v712_v8, 5 }
 0x14a   : > { %v759_v14 = vsel %vm725_vm8, %v758_v11, %v757_v44  ;;  %v925_v10 = vsel %vm725_vm8, %v700_v60, %v924_v21  ;;  %v708_v61 = vpop.permute.xlu1 %707  ;;  %v1548_v31 = vrot.slane %v2802_v41, 1  ;;  %v1654_v35 = vrot.slane %v2794_v38, 1 }
 0x14b   : > { %v761_v37 = vsel %vm728_vm9, %v760_v32, %v759_v14  ;;  %v762_v1 = vrot.slane %v708_v61, 4  ;;  %v828_v12 = vrot.slane %v708_v61, 5  ;;  %v927_v62 = vsel %vm728_vm9, %v926_v25, %v925_v10 }
 0x14c   : > { %v928_v3 = vrot.slane %v708_v61, 6  ;;  %v1263_v25 = vrot.slane %v2824_v50, 1 }
 0x14d   : > { %v763_v15 = vsel %vm731_vm10, %v762_v1, %v761_v37  ;;  %v829_v46 = vsel %vm731_vm10, %v828_v12, %v827_v19  ;;  %v1262_v19 = vrot.slane %v2796_v39, 2  ;;  %v1653_v37 = vrot.slane %v2802_v41, 2 }
 0x14e   : > { %v929_v44 = vsel %vm731_vm10, %v928_v3, %v927_v62  ;;  %v716_v60 = vpop.permute.xlu1 %715  ;;  %v831_v11 = vsel %vm734_vm11, %v830_v56, %v829_v46  ;;  %v765_v13 = vsel %vm734_vm11, %v764_v33, %v763_v15  ;;  %v1157_v62 = vrot.slane %v2796_v39, 1 }
 0x14f   : > { %v766_v14 = vrot.slane %v716_v60, 2  ;;  %v832_v21 = vrot.slane %v716_v60, 3  ;;  %v931_v10 = vsel %vm734_vm11, %v930_v17, %v929_v44  ;;  %v932_v32 = vrot.slane %v716_v60, 4 }
 0x150   : > { %v1159_v1 = vrot.slane %v2822_v49, 7  ;;  %v1158_v33 = vsel %vm722_vm7, %v2824_v50, %v1157_v62  ;;  %v1550_v56 = vrot.slane %v2789_v36, 7  ;;  %v1264_v3 = vsel %vm722_vm7, %v1263_v25, %v1262_v19 }
 0x151   : > { %v2971_v61 = vsel %vm737_vm12, %v832_v21, %v831_v11  ;;  %v2974_v8 = vsel %vm737_vm12, %v932_v32, %v931_v10  ;;  %v2977_v12 = vsel %vm737_vm12, %v766_v14, %v765_v13  ;;  %v1549_v17 = vsel %vm722_vm7, %v2794_v38, %v1548_v31 }
 0x152   : > { %v895_v15 = vrot.slane %v2937_v26, 1  ;;  %v1655_v46 = vsel %vm722_vm7, %v1654_v35, %v1653_v37  ;;  %v1160_v44 = vsel %vm725_vm8, %v1159_v1, %v1158_v33  ;;  %v1161_v60 = vrot.slane %v2827_v51, 6 }
 0x153   : > { %v1266_v11 = vrot.slane %v2827_v51, 7  ;;  %v1265_v13 = vsel %vm725_vm8, %v2822_v49, %v1264_v3  ;;  %v1552_v14 = vrot.slane %v2843_v59, 6  ;;  %v1163_v21 = vrot.slane %v2861_v6, 5 }
 0x154   : > { %v894_v10 = vrot.slane %v2913_v34, 2  ;;  %v1551_v19 = vsel %vm725_vm8, %v1550_v56, %v1549_v17  ;;  %v1268_v25 = vrot.slane %v2861_v6, 6  ;;  %v3008_v31 = vsel %vm725_vm8, %v2789_v36, %v1655_v46  ;;  %v3017_v17 = vpop.permute.xlu1 %2402  ;;  %v3031_v56 = vpop.permute.xlu0 %719 }
 0x155   : > { %v908_v35 = vrot.slane %v2931_v7, 2  ;;  %v909_v1 = vrot.slane %v2941_v29, 1  ;;  %v1162_v33 = vsel %vm728_vm9, %v1161_v60, %v1160_v44  ;;  %v1267_v3 = vsel %vm728_vm9, %v1266_v11, %v1265_v13  ;;  %3984 = vst [vmem:[#allocation49_spill] sm:$0xff] %v3017_v17 }
 0x156   : > { %v896_v37 = vsel %vm722_vm7, %v895_v15, %v894_v10  ;;  %v1165_v62 = vrot.slane %v2840_v58, 4  ;;  %v1553_v46 = vsel %vm728_vm9, %v1552_v14, %v1551_v19  ;;  %v1164_v15 = vsel %vm731_vm10, %v1163_v21, %v1162_v33 }
 0x157   : > { %v3024_v10 = vsel %vm731_vm10, %v1268_v25, %v1267_v3  ;;  %v794_v44 = vrot.slane %v2913_v34, 1  ;;  %v897_v60 = vsel %vm725_vm8, %v2935_v23, %v896_v37  ;;  %v900_v11 = vrot.slane %v2945_v28, 6 }
 0x158   : > { %v898_v13 = vrot.slane %v2923_v57, 7  ;;  %v796_v14 = vrot.slane %v2935_v23, 7  ;;  %v910_v19 = vsel %vm722_vm7, %v909_v1, %v908_v35  ;;  %v902_v21 = vrot.slane %v2947_v0, 5 }
 0x159   : > { %v795_v25 = vsel %vm722_vm7, %v2937_v26, %v794_v44  ;;  %v904_v33 = vrot.slane %v2951_v5, 4  ;;  %v1166_v37 = vsel %vm734_vm11, %v1165_v62, %v1164_v15  ;;  %v1554_v3 = vrot.slane %v2866_v9, 5 }
 0x15a   : > { %v899_v41 = vsel %vm728_vm9, %v898_v13, %v897_v60  ;;  %v906_v17 = vrot.slane %v2953_v20, 3  ;;  %v1167_v35 = vrot.slane %v2886_v16, 3  ;;  %v742_v1 = vrot.slane %v2941_v29, 7 }
 0x15b   : > { %v911_v44 = vsel %vm725_vm8, %v2919_v53, %v910_v19  ;;  %v901_v34 = vsel %vm731_vm10, %v900_v11, %v899_v41  ;;  %v912_v62 = vrot.slane %v2929_v4, 7  ;;  %v797_v15 = vsel %vm725_vm8, %v796_v14, %v795_v25 }
 0x15c   : > { %v800_v32 = vrot.slane %v2945_v28, 5  ;;  %v903_v60 = vsel %vm734_vm11, %v902_v21, %v901_v34  ;;  %v798_v26 = vrot.slane %v2923_v57, 6  ;;  %v802_v6 = vrot.slane %v2947_v0, 4 }
 0x15d   : > { %v905_v41 = vsel %vm737_vm12, %v904_v33, %v903_v60  ;;  %v914_v11 = vrot.slane %v2933_v22, 6  ;;  %v913_v14 = vsel %vm728_vm9, %v912_v62, %v911_v44  ;;  %v804_v34 = vrot.slane %v2951_v5, 3 }
 0x15e   : > { %v907_v21 = vsel %vm740_vm13, %v906_v17, %v905_v41  ;;  %v799_v25 = vsel %vm728_vm9, %v798_v26, %v797_v15  ;;  %v743_v0 = vsel %vm722_vm7, %v742_v1, %v2931_v7  ;;  %v1555_v33 = vsel %vm731_vm10, %v1554_v3, %v1553_v46 }
 0x15f   : > { %v744_v60 = vrot.slane %v2919_v53, 6  ;;  %v801_v44 = vsel %vm731_vm10, %v800_v32, %v799_v25  ;;  %v1168_v17 = vsel %vm737_vm12, %v1167_v35, %v1166_v37  ;;  %v1272_v26 = vrot.slane %v2886_v16, 4 }
 0x160   : > { %v1558_v1 = vrot.slane %v2890_v18, 3  ;;  %v803_v62 = vsel %vm734_vm11, %v802_v6, %v801_v44  ;;  %v915_v41 = vsel %vm731_vm10, %v914_v11, %v913_v14  ;;  %v1560_v37 = vrot.slane %v2901_v24, 2 }
 0x161   : > { %v745_v46 = vsel %vm725_vm8, %v744_v60, %v743_v0  ;;  %v805_v32 = vsel %vm737_vm12, %v804_v34, %v803_v62  ;;  %v746_v35 = vrot.slane %v2929_v4, 5  ;;  %v3986_v6 = vrot.slane %v2854_v2, 2 }
 0x162   : > { %v754_v57 = vrot.slane %v2949_v63, 1 }
 0x163   : > { %v3095_v11 = vsel %vm740_vm13, %v3986_v6, %v1168_v17  ;;  %v1274_v17 = vrot.slane %v2854_v2, 3  ;;  %v747_v6 = vsel %vm728_vm9, %v746_v35, %v745_v46  ;;  %v3990_v35 = vrot.slane %v2866_v9, 6  ;;  %v4001_v2 = vld [vmem:[#allocation30_spill] sm:$0xff] }
 0x173   : > { %v561_v23 = vpop.permute.xlu1 %560 }
 0x174   : > { %585 = vst.msk [vmem:[#allocation2] sm:$0xff] %vm584_vm14, %v561_v23  ;;  %v563_v13 = vpop.permute.xlu0 %562 }
 0x175   : > { %v3057_v19 = vsel %vm412_vm5, %v561_v23, %v563_v13  ;;  %587 = vst.msk [vmem:[#allocation2 + $0x10] sm:$0xff] %vm412_vm5, %v563_v13  ;;  %v806_v23 = vrot.slane %v2953_v20, 2  ;;  %v916_v20 = vrot.slane %v2939_v27, 5 }
 0x176   : > { %v3070_v13 = vmul.f32 %v907_v21, %v3057_v19 }
 0x177   : > { %v565_v28 = vpop.permute.xlu1 %564  ;;  %v3098_v0 = vsel %vm740_vm13, %v806_v23, %v805_v32  ;;  %v917_v62 = vsel %vm734_vm11, %v916_v20, %v915_v41  ;;  %v3988_v32 = vrot.slane %v2804_v42, 4  ;;  %v3989_v41 = vrot.slane %v2840_v58, 5 }
 0x178   : > { %588 = vst.msk [vmem:[#allocation2 + $0x18] sm:$0xff] %vm584_vm14, %v565_v28  ;;  %v567_v15 = vpop.permute.xlu0 %566 }
 0x179   : > { %v3084_v3 = vsel %vm412_vm5, %v565_v28, %v567_v15  ;;  %590 = vst.msk [vmem:[#allocation2 + $0x28] sm:$0xff] %vm412_vm5, %v567_v15  ;;  %v3987_v28 = vrot.slane %v2843_v59, 7  ;;  %v918_v15 = vrot.slane %v2943_v30, 4 }
 0x17b   : > { %v3090_v25 = vld [vmem:[#allocation2] sm:$0xff]  ;;  %v1658_v14 = vsel %vm728_vm9, %v3987_v28, %v3008_v31  ;;  %v1557_v31 = vsel %vm734_vm11, %v3988_v32, %v1555_v33  ;;  %v748_v28 = vrot.slane %v2933_v22, 4  ;;  %v1271_v33 = vsel %vm734_vm11, %v3989_v41, %v3024_v10 }
 0x17c   : > { %3985 = vst [vmem:[#allocation50_spill] sm:$0xff] %v3090_v25  ;;  %v571_v34 = vpop.permute.xlu1 %570  ;;  %v1202_v60 = vmul.f32 %v3095_v11, %v3090_v25  ;;  %v839_v44 = vmul.f32 %v3098_v0, %v3090_v25  ;;  %v569_v23 = vpop.permute.xlu0 %568  ;;  %v1559_v20 = vsel %vm737_vm12, %v1558_v1, %v1557_v31  ;;  %v3128_v46 = vld [vmem:[#allocation2 + $0x10] sm:$0xff]  ;;  %v1660_v32 = vsel %vm731_vm10, %v3990_v35, %v1658_v14 }
 0x17d   : > { %593 = vst.msk [vmem:[#allocation2 + $0x40] sm:$0xff] %vm412_vm5, %v571_v34  ;;  %v3119_v5 = vsel %vm412_vm5, %v569_v23, %v571_v34  ;;  %v3135_v34 = vsel %vm740_vm13, %v1560_v37, %v1559_v20  ;;  %v919_v1 = vsel %vm737_vm12, %v918_v15, %v917_v62  ;;  %v749_v31 = vsel %vm731_vm10, %v748_v28, %v747_v6 }
 0x17e   : > { %591 = vst.msk [vmem:[#allocation2 + $0x30] sm:$0xff] %vm584_vm14, %v569_v23  ;;  %1220 = vrot.lane.b32.xlu1 %v1202_v60, %s2479_s26  ;;  %857 = vrot.lane.b32.xlu0 %v839_v44, %s2479_s26  ;;  %592 = vst [vmem:[#allocation2 + $0x38] sm:$0xff] %v3119_v5  ;;  %v1273_v60 = vsel %vm737_vm12, %v1272_v26, %v1271_v33  ;;  %v920_v44 = vrot.slane %v2949_v63, 3  ;;  %v1593_v10 = vmul.f32 %v3135_v34, %v3090_v25  ;;  %vm1394_vm5 = vcmask 1039360  }
 0x17f   : > { %v939_v23 = vmul.f32 %v907_v21, %v3090_v25  ;;  %v750_v14 = vrot.slane %v2939_v27, 3  ;;  %v834_v41 = vrot.slane %v3031_v56, 2  ;;  %v934_v37 = vrot.slane %v3031_v56, 3 }
 0x180   : > { %v3148_v20 = vmul.f32 %v907_v21, %v3128_v46  ;;  %v1663_v26 = vrot.slane %v2890_v18, 4  ;;  %v1665_v62 = vrot.slane %v2901_v24, 3  ;;  %v3155_v15 = vsel %vm740_vm13, %v1274_v17, %v1273_v60  ;;  %v4002_v24 = vld [vmem:[#allocation28_spill] sm:$0xff] }
 0x181   : > { %v3158_v6 = vsel %vm740_vm13, %v920_v44, %v919_v1  ;;  %v3166_v21 = vsel %vm740_vm13, %v834_v41, %v2971_v61  ;;  %v3170_v33 = vsel %vm740_vm13, %v934_v37, %v2974_v8  ;;  %v751_v35 = vsel %vm734_vm11, %v750_v14, %v749_v31 }
 0x182   : > { %1611 = vrot.lane.b32.xlu1 %v1593_v10, %s2479_s26  ;;  %957 = vrot.lane.b32.xlu0 %v939_v23, %s2480_s28  ;;  %v3162_v28 = vmul.f32 %v3158_v6, %v3084_v3  ;;  %v1307_v17 = vmul.f32 %v3155_v15, %v3090_v25  ;;  %v841_v60 = vmul.f32 %v3098_v0, %v3128_v46  ;;  %v1171_v44 = vrot.slane %v2819_v48, 1 }
 0x183   : > { %v3179_v1 = vmul.f32 %v3166_v21, %v3119_v5  ;;  %v3183_v61 = vmul.f32 %v3170_v33, %v3119_v5  ;;  %v3991_v8 = vrot.slane %v2804_v42, 5  ;;  %v752_v23 = vrot.slane %v2943_v30, 2 }
 0x184   : > { %v1173_v37 = vrot.slane %v2812_v45, 7  ;;  %v1572_v42 = vrot.slane %v4002_v24, 3 }
 0x185   : > { %v1662_v10 = vsel %vm734_vm11, %v3991_v8, %v1660_v32  ;;  %v753_v41 = vsel %vm737_vm12, %v752_v23, %v751_v35  ;;  %v1203_v8 = vmul.f32 %v3095_v11, %v3057_v19  ;;  %v1277_v35 = vrot.slane %v2829_v52, 1  ;;  %v3213_v23 = vld [vmem:[#allocation2 + $0x30] sm:$0xff] }
 0x186   : > { %v1664_v31 = vsel %vm737_vm12, %v1663_v26, %v1662_v10  ;;  %1325 = vrot.lane.b32.xlu1 %v1307_v17, %s2480_s28  ;;  %861 = vrot.lane.b32.xlu0 %v841_v60, %s2479_s26  ;;  %v3203_v26 = vld [vmem:[#allocation2 + $0x18] sm:$0xff]  ;;  %v1172_v17 = vsel %vm722_vm7, %v2829_v52, %v1171_v44  ;;  %v1276_v60 = vrot.slane %v2819_v48, 2  ;;  %v768_v10 = vrot.slane %v3031_v56, 1 }
 0x187   : > { %v3194_v14 = vsel %vm740_vm13, %v1665_v62, %v1664_v31  ;;  %v808_v62 = vrot.slane %v2931_v7, 1  ;;  %v755_v31 = vsel %vm740_vm13, %v754_v57, %v753_v41  ;;  %v1174_v48 = vsel %vm725_vm8, %v1173_v37, %v1172_v17 }
 0x188   : > { %v1698_v32 = vmul.f32 %v3194_v14, %v3090_v25  ;;  %v1175_v25 = vrot.slane %v2837_v55, 6  ;;  %v3218_v44 = vmul.f32 %v3203_v26, %v755_v31  ;;  %v3221_v7 = vmul.f32 %v755_v31, %v3084_v3 }
 0x189   : > { %v1204_v56 = vmul.f32 %v3095_v11, %v3128_v46  ;;  %v1562_v57 = vrot.slane %v2807_v43, 1  ;;  %v809_v41 = vsel %vm722_vm7, %v2941_v29, %v808_v62  ;;  %v1564_v37 = vrot.slane %v2817_v47, 7  ;;  %v3996_v62 = vld [vmem:[#allocation17_spill] sm:$0xff] }
 0x18a   : > { %1716 = vrot.lane.b32.xlu1 %v1698_v32, %s2480_s28  ;;  %1222 = vrot.lane.b32.xlu0 %v1203_v8, %s2479_s26  ;;  %3992 = vst [vmem:[#allocation51_spill] sm:$0xff] %v3218_v44  ;;  %3993 = vst [vmem:[#allocation52_spill] sm:$0xff] %v3221_v7  ;;  %v1594_v32 = vmul.f32 %v3135_v34, %v3057_v19  ;;  %v769_v8 = vsel %vm740_vm13, %v768_v10, %v2977_v12  ;;  %v1177_v17 = vrot.slane %v2835_v54, 5 }
 0x18b   : > { %v3234_v44 = vmul.f32 %v3213_v23, %v769_v8  ;;  %v3237_v31 = vmul.f32 %v769_v8, %v3119_v5  ;;  %v1278_v11 = vsel %vm722_vm7, %v1277_v35, %v1276_v60  ;;  %v810_v7 = vrot.slane %v2919_v53, 7  ;;  %v3997_v8 = vld [vmem:[#allocation23_spill] sm:$0xff] }
 0x18c   : > { %v1566_v29 = vrot.slane %v2798_v40, 6  ;;  %v1176_v12 = vsel %vm728_vm9, %v1175_v25, %v1174_v48  ;;  %v1563_v10 = vsel %vm722_vm7, %v3996_v62, %v1562_v57  ;;  %v1595_v53 = vmul.f32 %v3135_v34, %v3128_v46  ;;  %v3998_v57 = vld [vmem:[#allocation16_spill] sm:$0xff] }
 0x18d   : > { %3994 = vst [vmem:[#allocation53_spill] sm:$0xff] %v3234_v44  ;;  %3995 = vst [vmem:[#allocation54_spill] sm:$0xff] %v3237_v31  ;;  %v1179_v31 = vrot.slane %v3997_v8, 4  ;;  %v1667_v44 = vrot.slane %v2807_v43, 2  ;;  %v811_v60 = vsel %vm725_vm8, %v810_v7, %v809_v41  ;;  %v1308_v35 = vmul.f32 %v3155_v15, %v3057_v19  ;;  %v3999_v7 = vld [vmem:[#allocation21_spill] sm:$0xff] }
 0x18e   : > { %1224 = vrot.lane.b32.xlu1 %v1204_v56, %s2479_s26  ;;  %1613 = vrot.lane.b32.xlu0 %v1594_v32, %s2479_s26  ;;  %v1279_v56 = vsel %vm725_vm8, %v2812_v45, %v1278_v11  ;;  %v1280_v48 = vrot.slane %v2837_v55, 7  ;;  %v1668_v25 = vrot.slane %v3996_v62, 1  ;;  %v812_v32 = vrot.slane %v2929_v4, 6  ;;  %v4000_v45 = vld [vmem:[#allocation25_spill] sm:$0xff] }
 0x18f   : > { %v1181_v52 = vrot.slane %v3998_v57, 3  ;;  %v1565_v43 = vsel %vm725_vm8, %v1564_v37, %v1563_v10  ;;  %v1568_v41 = vrot.slane %v3999_v7, 5  ;;  %v1178_v34 = vsel %vm731_vm10, %v1177_v17, %v1176_v12 }
 0x190   : > { %v1180_v11 = vsel %vm734_vm11, %v1179_v31, %v1178_v34  ;;  %v1570_v55 = vrot.slane %v4000_v45, 4  ;;  %v1183_v62 = vrot.slane %v4001_v2, 2  ;;  %v813_v4 = vsel %vm728_vm9, %v812_v32, %v811_v60 }
 0x191   : > { %v814_v37 = vrot.slane %v2933_v22, 5  ;;  %v1309_v10 = vmul.f32 %v3155_v15, %v3128_v46  ;;  %v1699_v17 = vmul.f32 %v3194_v14, %v3057_v19  ;;  %v1282_v12 = vrot.slane %v2835_v54, 6 }
 0x192   : > { %1615 = vrot.lane.b32.xlu1 %v1595_v53, %s2479_s26  ;;  %1327 = vrot.lane.b32.xlu0 %v1308_v35, %s2480_s28  ;;  %v1281_v31 = vsel %vm728_vm9, %v1280_v48, %v1279_v56  ;;  %v1567_v53 = vsel %vm728_vm9, %v1566_v29, %v1565_v43  ;;  %v1669_v35 = vsel %vm722_vm7, %v1668_v25, %v1667_v44  ;;  %v1284_v15 = vrot.slane %v3997_v8, 5 }
 0x193   : > { %v1569_v60 = vsel %vm731_vm10, %v1568_v41, %v1567_v53  ;;  %v815_v32 = vsel %vm731_vm10, %v814_v37, %v813_v4  ;;  %v1182_v22 = vsel %vm737_vm12, %v1181_v52, %v1180_v11  ;;  %v816_v56 = vrot.slane %v2939_v27, 4  ;;  %v4003_v41 = vld [vmem:[#allocation9_spill] sm:$0xff] }
 0x194   : > { %v1571_v34 = vsel %vm734_vm11, %v1570_v55, %v1569_v60  ;;  %v1184_v43 = vsel %vm740_vm13, %v1183_v62, %v1182_v22  ;;  %v1700_v44 = vmul.f32 %v3194_v14, %v3128_v46  ;;  %v1671_v25 = vrot.slane %v2798_v40, 7 }
 0x195   : > { %v1205_v29 = vmul.f32 %v1184_v43, %v3203_v26  ;;  %v1573_v48 = vsel %vm737_vm12, %v1572_v42, %v1571_v34  ;;  %v1574_v4 = vrot.slane %v4003_v41, 2  ;;  %v1283_v52 = vsel %vm731_vm10, %v1282_v12, %v1281_v31 }
 0x196   : > { %1329 = vrot.lane.b32.xlu1 %v1309_v10, %s2480_s28  ;;  %1718 = vrot.lane.b32.xlu0 %v1699_v17, %s2480_s28  ;;  %v817_v11 = vsel %vm734_vm11, %v816_v56, %v815_v32  ;;  %v1286_v55 = vrot.slane %v3998_v57, 4  ;;  %v1670_v27 = vsel %vm725_vm8, %v2817_v47, %v1669_v35  ;;  %v1673_v62 = vrot.slane %v3999_v7, 6 }
 0x197   : > { %v818_v14 = vrot.slane %v2943_v30, 3  ;;  %v1285_v42 = vsel %vm734_vm11, %v1284_v15, %v1283_v52  ;;  %v1675_v37 = vrot.slane %v4000_v45, 5  ;;  %v1288_v10 = vrot.slane %v4001_v2, 3  ;;  %v4017_v2 = vld [vmem:[#allocation42_spill] sm:$0xff] }
 0x198   : > { %v1575_v17 = vsel %vm740_vm13, %v1574_v4, %v1573_v48  ;;  %v1677_v12 = vrot.slane %v4002_v24, 4  ;;  %v840_v31 = vmul.f32 %v3098_v0, %v3057_v19  ;;  %v1672_v35 = vsel %vm728_vm9, %v1671_v25, %v1670_v27  ;;  %v3330_v48 = vld [vmem:[#allocation2 + $0x28] sm:$0xff]  ;;  %v4005_v27 = vld [vmem:[#allocation33_spill] sm:$0xff] }
 0x199   : > { %v1596_v53 = vmul.f32 %v1575_v17, %v3203_v26  ;;  %v819_v30 = vsel %vm737_vm12, %v818_v14, %v817_v11  ;;  %v820_v60 = vrot.slane %v2949_v63, 2  ;;  %v1674_v32 = vsel %vm731_vm10, %v1673_v62, %v1672_v35  ;;  %v4004_v11 = vld [vmem:[#allocation20_spill] sm:$0xff]  ;;  %v4006_v14 = vld [vmem:[#allocation34_spill] sm:$0xff] }
 0x19a   : > { %1720 = vrot.lane.b32.xlu1 %v1700_v44, %s2480_s28  ;;  %1226 = vrot.lane.b32.xlu0 %v1205_v29, %s2479_s26  ;;  %v1287_v22 = vsel %vm737_vm12, %v1286_v55, %v1285_v42  ;;  %v1676_v15 = vsel %vm734_vm11, %v1675_v37, %v1674_v32  ;;  %v1679_v29 = vrot.slane %v4003_v41, 3  ;;  %v1185_v55 = vrot.slane %v4004_v11, 1  ;;  %v4016_v41 = vld [vmem:[#allocation41_spill] sm:$0xff] }
 0x19b   : > { %v1289_v0 = vsel %vm740_vm13, %v1288_v10, %v1287_v22  ;;  %v3323_v34 = vsel %vm740_vm13, %v820_v60, %v819_v30  ;;  %v1678_v44 = vsel %vm737_vm12, %v1677_v12, %v1676_v15  ;;  %v1187_v62 = vrot.slane %v4005_v27, 7  ;;  %v4008_v60 = vld [vmem:[#allocation22_spill] sm:$0xff] }
 0x19c   : > { %v1310_v56 = vmul.f32 %v1289_v0, %v3203_v26  ;;  %v842_v63 = vmul.f32 %v3323_v34, %v3203_v26  ;;  %v1680_v25 = vsel %vm740_vm13, %v1679_v29, %v1678_v44  ;;  %v844_v52 = vmul.f32 %v3323_v34, %v3330_v48 }
 0x19d   : > { %v1701_v4 = vmul.f32 %v1680_v25, %v3203_v26  ;;  %v1186_v42 = vsel %vm722_vm7, %v4006_v14, %v1185_v55  ;;  %v1291_v37 = vrot.slane %v4006_v14, 1  ;;  %v1207_v10 = vmul.f32 %v1184_v43, %v3330_v48  ;;  %v4010_v55 = vld [vmem:[#allocation35_spill] sm:$0xff] }
 0x19e   : > { %859 = vrot.lane.b32.xlu1 %v840_v31, %s2479_s26  ;;  %1617 = vrot.lane.b32.xlu0 %v1596_v53, %s2479_s26  ;;  %v1206_v12 = vmul.f32 %v1184_v43, %v3084_v3  ;;  %v1290_v31 = vrot.slane %v4004_v11, 2  ;;  %v4007_v53 = vld [vmem:[#allocation32_spill] sm:$0xff]  ;;  %v1188_v35 = vsel %vm725_vm8, %v1187_v62, %v1186_v42  ;;  %v1189_v32 = vrot.slane %v4008_v60, 6  ;;  %v4011_v42 = vld [vmem:[#allocation37_spill] sm:$0xff] }
 0x19f   : > { %v1576_v30 = vrot.slane %v4007_v53, 1  ;;  %v1598_v15 = vmul.f32 %v1575_v17, %v3330_v48  ;;  %v1294_v44 = vrot.slane %v4008_v60, 7  ;;  %v1681_v29 = vrot.slane %v4007_v53, 2 }
 0x1a0   : > { %v1292_v22 = vsel %vm722_vm7, %v1291_v37, %v1290_v31  ;;  %v1580_v37 = vrot.slane %v4011_v42, 6  ;;  %v4013_v31 = vld [vmem:[#allocation38_spill] sm:$0xff]  ;;  %v1586_v14 = vrot.slane %v4016_v41, 3  ;;  %v1685_v57 = vrot.slane %v4011_v42, 7 }
 0x1a1   : > { %v1577_v62 = vsel %vm722_vm7, %v4010_v55, %v1576_v30  ;;  %v1582_v53 = vrot.slane %v4013_v31, 5  ;;  %v1588_v24 = vrot.slane %v4017_v2, 2 }
 0x1a2   : > { %1331 = vrot.lane.b32.xlu0 %v1310_v56, %s2480_s28  ;;  %863 = vrot.lane.b32.xlu1 %v842_v63, %s2479_s26  ;;  %v1597_v56 = vmul.f32 %v1575_v17, %v3084_v3  ;;  %v4009_v63 = vld [vmem:[#allocation11_spill] sm:$0xff]  ;;  %v1682_v17 = vrot.slane %v4010_v55, 1 }
 0x1a3   : > { %v1578_v43 = vrot.slane %v4009_v63, 7 }
 0x1a6   : > { %1722 = vrot.lane.b32.xlu0 %v1701_v4, %s2480_s28  ;;  %867 = vrot.lane.b32.xlu1 %v844_v52, %s2479_s26  ;;  %v1190_v4 = vsel %vm728_vm9, %v1189_v32, %v1188_v35  ;;  %v1293_v52 = vsel %vm725_vm8, %v4005_v27, %v1292_v22  ;;  %v1312_v35 = vmul.f32 %v1289_v0, %v3330_v48  ;;  %v4015_v22 = vld [vmem:[#allocation39_spill] sm:$0xff] }
 0x1a7   : > { %v1311_v32 = vmul.f32 %v1289_v0, %v3084_v3  ;;  %v1584_v11 = vrot.slane %v4015_v22, 4  ;;  %v1295_v55 = vsel %vm728_vm9, %v1294_v44, %v1293_v52  ;;  %v1579_v27 = vsel %vm725_vm8, %v1578_v43, %v1577_v62  ;;  %v4018_v62 = vld [vmem:[#allocation27_spill] sm:$0xff] }
 0x1a8   : > { %v1683_v0 = vsel %vm722_vm7, %v1682_v17, %v1681_v29  ;;  %v1687_v44 = vrot.slane %v4013_v31, 6  ;;  %v1703_v43 = vmul.f32 %v1680_v25, %v3330_v48  ;;  %v1702_v52 = vmul.f32 %v1680_v25, %v3084_v3 }
 0x1a9   : > { %v1689_v29 = vrot.slane %v4015_v22, 5  ;;  %v1684_v17 = vsel %vm725_vm8, %v4009_v63, %v1683_v0  ;;  %v843_v0 = vmul.f32 %v3323_v34, %v3084_v3 }
 0x1aa   : > { %1230 = vrot.lane.b32.xlu0 %v1207_v10, %s2479_s26  ;;  %1228 = vrot.lane.b32.xlu1 %v1206_v12, %s2479_s26  ;;  %v4012_v10 = vld [vmem:[#allocation24_spill] sm:$0xff] }
 0x1ab   : > { %v1191_v12 = vrot.slane %v4012_v10, 5 }
 0x1ad   : > { %v1192_v30 = vsel %vm731_vm10, %v1191_v12, %v1190_v4  ;;  %v1195_v12 = vrot.slane %v4018_v62, 3 }
 0x1ae   : > { %1621 = vrot.lane.b32.xlu0 %v1598_v15, %s2479_s26  ;;  %1619 = vrot.lane.b32.xlu1 %v1597_v56, %s2479_s26  ;;  %v1296_v15 = vrot.slane %v4012_v10, 6  ;;  %v4014_v56 = vld [vmem:[#allocation26_spill] sm:$0xff]  ;;  %v1581_v10 = vsel %vm728_vm9, %v1580_v37, %v1579_v27 }
 0x1af   : > { %v1193_v60 = vrot.slane %v4014_v56, 4  ;;  %v1583_v4 = vsel %vm731_vm10, %v1582_v53, %v1581_v10  ;;  %v1691_v53 = vrot.slane %v4016_v41, 4  ;;  %v1298_v10 = vrot.slane %v4014_v56, 5 }
 0x1b0   : > { %v1297_v25 = vsel %vm731_vm10, %v1296_v15, %v1295_v55 }
 0x1b1   : > { %v1194_v27 = vsel %vm734_vm11, %v1193_v60, %v1192_v30  ;;  %v1299_v15 = vsel %vm734_vm11, %v1298_v10, %v1297_v25 }
 0x1b2   : > { %1335 = vrot.lane.b32.xlu0 %v1312_v35, %s2480_s28  ;;  %1333 = vrot.lane.b32.xlu1 %v1311_v32, %s2480_s28  ;;  %v1585_v35 = vsel %vm734_vm11, %v1584_v11, %v1583_v4  ;;  %v1686_v11 = vsel %vm728_vm9, %v1685_v57, %v1684_v17  ;;  %v1693_v32 = vrot.slane %v4017_v2, 3  ;;  %v1196_v4 = vsel %vm737_vm12, %v1195_v12, %v1194_v27  ;;  %v3422_v17 = vld [vmem:[#allocation2 + $0x40] sm:$0xff] }
 0x1b3   : > { %v1587_v37 = vsel %vm737_vm12, %v1586_v14, %v1585_v35  ;;  %v1688_v30 = vsel %vm731_vm10, %v1687_v44, %v1686_v11  ;;  %v1300_v57 = vrot.slane %v4018_v62, 4 }
 0x1b4   : > { %v1589_v60 = vsel %vm740_vm13, %v1588_v24, %v1587_v37  ;;  %v1690_v55 = vsel %vm734_vm11, %v1689_v29, %v1688_v30 }
 0x1b5   : > { %v1599_v14 = vmul.f32 %v1589_v60, %v3213_v23  ;;  %v1692_v35 = vsel %vm737_vm12, %v1691_v53, %v1690_v55  ;;  %v1301_v29 = vsel %vm737_vm12, %v1300_v57, %v1299_v15  ;;  %v1601_v25 = vmul.f32 %v1589_v60, %v3422_v17  ;;  %v1837_v55 = vld [vmem:[%s3863_s4 + $0x8] sm:$0xff]  ;;  %v1838_v57 = vld [vmem:[%s3863_s4 + $0x10] sm:$0xff] }
 0x1b6   : > { %1726 = vrot.lane.b32.xlu0 %v1703_v43, %s2480_s28  ;;  %1724 = vrot.lane.b32.xlu1 %v1702_v52, %s2480_s28  ;;  %v4019_v43 = vld [vmem:[#allocation29_spill] sm:$0xff]  ;;  %v1694_v24 = vsel %vm740_vm13, %v1693_v32, %v1692_v35  ;;  %v947_v15 = vmul.f32 %v3170_v33, %v3422_v17 }
 0x1b7   : > { %v1197_v52 = vrot.slane %v4019_v43, 2  ;;  %v1704_v44 = vmul.f32 %v1694_v24, %v3213_v23  ;;  %v1302_v27 = vrot.slane %v4019_v43, 3  ;;  %v1706_v10 = vmul.f32 %v1694_v24, %v3422_v17 }
 0x1b9   : > { %v1198_v34 = vsel %vm740_vm13, %v1197_v52, %v1196_v4  ;;  %v1303_v37 = vsel %vm740_vm13, %v1302_v27, %v1301_v29  ;;  %v1705_v4 = vmul.f32 %v1694_v24, %v3119_v5  ;;  %v942_v52 = vmul.f32 %v3158_v6, %v3203_v26 }
 0x1ba   : > { %1623 = vrot.lane.b32.xlu1 %v1599_v14, %s2479_s26  ;;  %865 = vrot.lane.b32.xlu0 %v843_v0, %s2479_s26  ;;  %v1208_v12 = vmul.f32 %v1198_v34, %v3213_v23  ;;  %v1313_v53 = vmul.f32 %v1303_v37, %v3213_v23  ;;  %v1210_v11 = vmul.f32 %v1198_v34, %v3422_v17 }
 0x1bb   : > { %v1315_v32 = vmul.f32 %v1303_v37, %v3422_v17  ;;  %v1209_v30 = vmul.f32 %v1198_v34, %v3119_v5  ;;  %v1600_v14 = vmul.f32 %v1589_v60, %v3119_v5  ;;  %v1314_v0 = vmul.f32 %v1303_v37, %v3119_v5 }
 0x1bc   : > { %v944_v60 = vmul.f32 %v3158_v6, %v3330_v48  ;;  %v945_v6 = vmul.f32 %v3170_v33, %v3213_v23  ;;  %v1094_v33 = vrot.slane %v2824_v50, 7  ;;  %v1487_v37 = vrot.slane %v2789_v36, 6  ;;  %v4021_v50 = vld [vmem:[#allocation6_spill] sm:$0xff] }
 0x1be   : > { %1728 = vrot.lane.b32.xlu1 %v1704_v44, %s2480_s28  ;;  %1232 = vrot.lane.b32.xlu0 %v1208_v12, %s2479_s26  ;;  %v1485_v44 = vrot.slane %v2794_v38, 7  ;;  %v1096_v12 = vrot.slane %v2822_v49, 6  ;;  %v1095_v29 = vsel %vm722_vm7, %v1094_v33, %v2796_v39  ;;  %v4022_v38 = vld [vmem:[#allocation44_spill] sm:$0xff]  ;;  %v1491_v39 = vrot.slane %v2866_v9, 4 }
 0x1c0   : > { %v1097_v49 = vsel %vm725_vm8, %v1096_v12, %v1095_v29 }
 0x1c2   : > { %1337 = vrot.lane.b32.xlu0 %v1313_v53, %s2480_s28  ;;  %1627 = vrot.lane.b32.xlu1 %v1601_v25, %s2479_s26  ;;  %v4020_v53 = vld [vmem:[#allocation19_spill] sm:$0xff] }
 0x1c3   : > { %v1100_v25 = vrot.slane %v4020_v53, 4  ;;  %v4028_v53 = vld [vmem:[#allocation40_spill] sm:$0xff] }
 0x1c6   : > { %1732 = vrot.lane.b32.xlu1 %v1706_v10, %s2480_s28  ;;  %1236 = vrot.lane.b32.xlu0 %v1210_v11, %s2479_s26  ;;  %v1486_v10 = vsel %vm722_vm7, %v1485_v44, %v4021_v50  ;;  %v1489_v11 = vrot.slane %v2843_v59, 5  ;;  %v1102_v59 = vrot.slane %v2840_v58, 3 }
 0x1ca   : > { %1341 = vrot.lane.b32.xlu0 %v1315_v32, %s2480_s28  ;;  %1234 = vrot.lane.b32.xlu1 %v1209_v30, %s2479_s26  ;;  %v721_v32 = vrot.slane %v4022_v38, 7 }
 0x1ce   : > { %1625 = vrot.lane.b32.xlu0 %v1600_v14, %s2479_s26  ;;  %1339 = vrot.lane.b32.xlu1 %v1314_v0, %s2480_s28  ;;  %v1488_v0 = vsel %vm725_vm8, %v1487_v37, %v1486_v10 }
 0x1d2   : > { %1730 = vrot.lane.b32.xlu0 %v1705_v4, %s2480_s28  ;;  %959 = vrot.lane.b32.xlu1 %v3070_v13, %s2480_s28  ;;  %v1836_v13 = vld [vmem:[%s3863_s4] sm:$0xff]  ;;  %v1104_v4 = vrot.slane %v2886_v16, 2 }
 0x1d6   : > { %961 = vrot.lane.b32.xlu0 %v3148_v20, %s2480_s28  ;;  %963 = vrot.lane.b32.xlu1 %v942_v52, %s2480_s28  ;;  %v845_v20 = vmul.f32 %v3166_v21, %v3213_v23  ;;  %v4023_v52 = vld [vmem:[#allocation43_spill] sm:$0xff] }
 0x1da   : > { %965 = vrot.lane.b32.xlu0 %v3162_v28, %s2480_s28  ;;  %967 = vrot.lane.b32.xlu1 %v944_v60, %s2480_s28  ;;  %v847_v28 = vmul.f32 %v3166_v21, %v3422_v17  ;;  %v724_v60 = vrot.slane %v4023_v52, 6  ;;  %v4030_v52 = vld [vmem:[#allocation46_spill] sm:$0xff] }
 0x1de   : > { %1841 = vperm.xlu0 %2399, %v1836_v13   ;;  %1846 = vperm.xlu1 %2400, %v1837_v55   ;;  %v1490_v13 = vsel %vm728_vm9, %v1489_v11, %v1488_v0  ;;  %v4024_v55 = vld [vmem:[#allocation36_spill] sm:$0xff] }
 0x1df   : > { %v1492_v9 = vsel %vm731_vm10, %v1491_v39, %v1490_v13  ;;  %v4029_v39 = vld [vmem:[#allocation45_spill] sm:$0xff] }
 0x1e2   : > { %869 = vrot.lane.b32.xlu0 %v845_v20, %s2479_s26  ;;  %969 = vrot.lane.b32.xlu1 %v945_v6, %s2480_s28  ;;  %v723_v20 = vsel %vm722_vm7, %v721_v32, %v4024_v55  ;;  %v1495_v6 = vrot.slane %v2890_v18, 2  ;;  %v4032_v55 = vld [vmem:[#allocation50_spill] sm:$0xff] }
 0x1e3   : > { %v726_v29 = vsel %vm725_vm8, %v724_v60, %v723_v20  ;;  %v733_v60 = vrot.slane %v4030_v52, 3 }
 0x1e6   : > { %873 = vrot.lane.b32.xlu0 %v847_v28, %s2479_s26  ;;  %973 = vrot.lane.b32.xlu1 %v947_v15, %s2480_s28  ;;  %v4025_v28 = vld [vmem:[#allocation7_spill] sm:$0xff] }
 0x1e7   : > { %v1493_v15 = vrot.slane %v4025_v28, 3 }
 0x1e9   : > { %v1494_v50 = vsel %vm734_vm11, %v1493_v15, %v1492_v9 }
 0x1ea   : > { %1851 = vperm.xlu0 %2399, %v1838_v57   ;;  %871 = vrot.lane.b32.xlu1 %v3179_v1, %s2479_s26  ;;  %v1098_v1 = vrot.slane %v2827_v51, 5  ;;  %v4026_v57 = vld [vmem:[#allocation31_spill] sm:$0xff]  ;;  %v1496_v18 = vsel %vm737_vm12, %v1495_v6, %v1494_v50  ;;  %v4033_v6 = vld [vmem:[#allocation49_spill] sm:$0xff]  ;;  %s2482_s26 = smov 126  }
 0x1eb   : > { %v1497_v33 = vrot.slane %v4026_v57, 1  ;;  %v3534_v28 = vunpack.i.l.bf16 %v4033_v6 }
 0x1ec   : > { %v1099_v51 = vsel %vm728_vm9, %v1098_v1, %v1097_v49  ;;  %v4027_v1 = vld [vmem:[#allocation18_spill] sm:$0xff] }
 0x1ed   : > { %v1101_v36 = vsel %vm731_vm10, %v1100_v25, %v1099_v51  ;;  %v1106_v37 = vrot.slane %v4027_v1, 1  ;;  %v727_v25 = vrot.slane %v4028_v53, 5  ;;  %v1498_v38 = vsel %vm740_vm13, %v1497_v33, %v1496_v18 }
 0x1ee   : > { %971 = vrot.lane.b32.xlu0 %v3183_v61, %s2480_s28  ;;  %v1103_v44 = vsel %vm734_vm11, %v1102_v59, %v1101_v36  ;;  %v730_v51 = vrot.slane %v4029_v39, 4  ;;  %v4031_v59 = vld [vmem:[#allocation47_spill] sm:$0xff]  ;;  %v1530_v20 = vmul.f32 %v1498_v38, %v4032_v55 }
 0x1ef   : > { %v1105_v58 = vsel %vm737_vm12, %v1104_v4, %v1103_v44  ;;  %v729_v10 = vsel %vm728_vm9, %v727_v25, %v726_v29  ;;  %v736_v13 = vrot.slane %v4031_v59, 2  ;;  %v1532_v29 = vmul.f32 %v1498_v38, %v3128_v46 }
 0x1f0   : > { %v3482_v35 = vpop.permute.xlu0 %857  ;;  %v1221_v21 = vpop.permute.xlu1 %1220  ;;  %v1107_v11 = vsel %vm740_vm13, %v1106_v37, %v1105_v58 }
 0x1f1   : > { %v1141_v36 = vmul.f32 %v1107_v11, %v3128_v46  ;;  %v1140_v9 = vmul.f32 %v1107_v11, %v3057_v19  ;;  %v1139_v15 = vmul.f32 %v1107_v11, %v4032_v55 }
 0x1f4   : > { %v3485_v24 = vpop.permute.xlu0 %957  ;;  %v1612_v34 = vpop.permute.xlu1 %1611 }
 0x1f8   : > { %v3492_v27 = vpop.permute.xlu0 %861  ;;  %v1326_v61 = vpop.permute.xlu1 %1325 }
 0x1fc   : > { %v1223_v30 = vpop.permute.xlu0 %1222  ;;  %v1717_v14 = vpop.permute.xlu1 %1716 }
 0x200   : > { %v1614_v16 = vpop.permute.xlu0 %1613  ;;  %v1225_v12 = vpop.permute.xlu1 %1224 }
 0x201   : > { %v1629_v0 = vsel %vm875_vm15, %v1612_v34, %v1614_v16  ;;  %v1239_v4 = vsel %vm875_vm15, %v1223_v30, %v1225_v12  ;;  %v1255_v57 = vadd.f32 %v1225_v12, %v1141_v36  ;;  %v1238_v34 = vsel %vm875_vm15, %v1221_v21, %v1223_v30  ;;  %v4034_v21 = vld [vmem:[#allocation48_spill] sm:$0xff] }
 0x202   : > { %v1644_v33 = vadd.f32 %v1629_v0, %v1530_v20  ;;  %v1254_v44 = vadd.f32 %v1239_v4, %v1140_v9  ;;  %v1531_v12 = vmul.f32 %v1498_v38, %v3057_v19  ;;  %v739_v30 = vrot.slane %v4034_v21, 1  ;;  %v4035_v20 = vld [vmem:[#allocation13_spill] sm:$0xff] }
 0x203   : > { %v3546_v0 = vunpack.i.h.bf16 %v4033_v6  ;;  %v1253_v46 = vadd.f32 %v1238_v34, %v1139_v15  ;;  %v1108_v9 = vrot.slane %v4035_v20, 7  ;;  %v1501_v21 = vrot.slane %v2817_v47, 6 }
 0x204   : > { %v1328_v32 = vpop.permute.xlu0 %1327  ;;  %v1616_v49 = vpop.permute.xlu1 %1615 }
 0x205   : > { %v1630_v37 = vsel %vm875_vm15, %v1614_v16, %v1616_v49  ;;  %v1343_v18 = vsel %vm975_vm0, %v1326_v61, %v1328_v32  ;;  %v1646_v36 = vadd.f32 %v1616_v49, %v1532_v29 }
 0x206   : > { %v1645_v16 = vadd.f32 %v1630_v37, %v1531_v12  ;;  %v4039_v12 = vld [vmem:[#allocation14_spill] sm:$0xff] }
 0x208   : > { %v1719_v58 = vpop.permute.xlu0 %1718  ;;  %v1330_v1 = vpop.permute.xlu1 %1329 }
 0x209   : > { %v1734_v53 = vsel %vm975_vm0, %v1717_v14, %v1719_v58  ;;  %v1344_v25 = vsel %vm975_vm0, %v1328_v32, %v1330_v1  ;;  %v1360_v50 = vadd.f32 %v1330_v1, %v1255_v57  ;;  %v732_v14 = vsel %vm731_vm10, %v730_v51, %v729_v10 }
 0x20a   : > { %v1749_v11 = vadd.f32 %v1734_v53, %v1644_v33  ;;  %v1359_v39 = vadd.f32 %v1344_v25, %v1254_v44  ;;  %v1358_v32 = vadd.f32 %v1343_v18, %v1253_v46  ;;  %v735_v49 = vsel %vm734_vm11, %v733_v60, %v732_v14  ;;  %v4037_v53 = vld [vmem:[#allocation12_spill] sm:$0xff] }
 0x20b   : > { %1380 = vrot.lane.b32.xlu1 %v1360_v50, %s2481_s20  ;;  %v738_v10 = vsel %vm737_vm12, %v736_v13, %v735_v49  ;;  %v3562_v51 = vsel %vm1776_vm1, %v3534_v28, %v3546_v0  ;;  %v1109_v25 = vsel %vm722_vm7, %v1108_v9, %v4037_v53  ;;  %v4040_v46 = vld [vmem:[#allocation8_spill] sm:$0xff]  ;;  %v1503_v49 = vrot.slane %v2798_v40, 5 }
 0x20c   : > { %v3551_v4 = vmul.f32 %v3534_v28, %v1749_v11  ;;  %v3553_v61 = vpop.permute.xlu0 %1226  ;;  %1378 = vrot.lane.b32.xlu0 %v1359_v39, %s2481_s20  ;;  %v1721_v38 = vpop.permute.xlu1 %1720  ;;  %v741_v57 = vsel %vm740_vm13, %v739_v30, %v738_v10  ;;  %v1112_v11 = vrot.slane %v4039_v12, 5  ;;  %v1114_v30 = vrot.slane %v2835_v54, 4  ;;  %v4041_v9 = vld [vmem:[#allocation28_spill] sm:$0xff]  ;;  %v4042_v10 = vld [vmem:[#allocation30_spill] sm:$0xff] }
 0x20d   : > { %v1735_v52 = vsel %vm975_vm0, %v1719_v58, %v1721_v38  ;;  %v1751_v59 = vadd.f32 %v1721_v38, %v1646_v36  ;;  %v773_v60 = vmul.f32 %v4032_v55, %v741_v57  ;;  %v774_v44 = vmul.f32 %v741_v57, %v3057_v19  ;;  %v4036_v58 = vld [vmem:[#allocation10_spill] sm:$0xff]  ;;  %v4038_v19 = vld [vmem:[#allocation17_spill] sm:$0xff] }
 0x20e   : > { %v1750_v6 = vadd.f32 %v1735_v52, %v1645_v16  ;;  %v1110_v13 = vrot.slane %v4036_v58, 6  ;;  %v1499_v18 = vrot.slane %v4038_v19, 7  ;;  %v1116_v16 = vrot.slane %v3997_v8, 3  ;;  %v4044_v58 = vld [vmem:[#allocation34_spill] sm:$0xff] }
 0x20f   : > { %v1783_v15 = vmul.f32 %v3546_v0, %v1751_v59  ;;  %1376 = vrot.lane.b32.xlu1 %v1358_v32, %s2481_s20  ;;  %v1505_v59 = vrot.slane %v3999_v7, 4  ;;  %v1507_v54 = vrot.slane %v4000_v45, 3  ;;  %v1122_v45 = vrot.slane %v4044_v58, 7 }
 0x210   : > { %v1782_v34 = vmul.f32 %v3562_v51, %v1750_v6  ;;  %v1618_v33 = vpop.permute.xlu0 %1617  ;;  %v860_v29 = vpop.permute.xlu1 %859  ;;  %v1500_v36 = vsel %vm722_vm7, %v1499_v18, %v4040_v46  ;;  %v1509_v6 = vrot.slane %v4041_v9, 2 }
 0x211   : > { %v876_v1 = vsel %vm875_vm15, %v3482_v35, %v860_v29  ;;  %v877_v37 = vsel %vm875_vm15, %v860_v29, %v3492_v27  ;;  %1803 = vrot.lane.b32.xlu0 %v1783_v15, %s2482_s26  ;;  %v1111_v27 = vsel %vm725_vm8, %v1110_v13, %v1109_v25  ;;  %v1502_v52 = vsel %vm725_vm8, %v1501_v21, %v1500_v36  ;;  %v4045_v25 = vld [vmem:[#allocation9_spill] sm:$0xff]  ;;  %v4047_v36 = vld [vmem:[#allocation20_spill] sm:$0xff] }
 0x212   : > { %v3578_v50 = vadd.f32 %v876_v1, %v773_v60  ;;  %v3580_v55 = vadd.f32 %v877_v37, %v774_v44  ;;  %v1113_v14 = vsel %vm728_vm9, %v1112_v11, %v1111_v27  ;;  %v1120_v15 = vrot.slane %v4042_v10, 1  ;;  %v4046_v27 = vld [vmem:[#allocation33_spill] sm:$0xff] }
 0x213   : > { %1801 = vrot.lane.b32.xlu1 %v1782_v34, %s2482_s26  ;;  %v1115_v47 = vsel %vm731_vm10, %v1114_v30, %v1113_v14  ;;  %v4043_v34 = vld [vmem:[#allocation16_spill] sm:$0xff]  ;;  %v1504_v44 = vsel %vm728_vm9, %v1503_v49, %v1502_v52  ;;  %v1511_v19 = vrot.slane %v4045_v25, 1  ;;  %v1124_v21 = vrot.slane %v4046_v27, 6 }
 0x214   : > { %v3585_v35 = vpop.permute.xlu0 %1331  ;;  %v3587_v39 = vpop.permute.xlu1 %863  ;;  %v1117_v20 = vsel %vm734_vm11, %v1116_v16, %v1115_v47  ;;  %v1118_v60 = vrot.slane %v4043_v34, 2  ;;  %v1506_v7 = vsel %vm731_vm10, %v1505_v59, %v1504_v44  ;;  %v1123_v14 = vsel %vm722_vm7, %v1122_v45, %v4047_v36 }
 0x215   : > { %v1508_v40 = vsel %vm734_vm11, %v1507_v54, %v1506_v7  ;;  %v1515_v25 = vrot.slane %v4009_v63, 6  ;;  %v1517_v63 = vrot.slane %v4011_v42, 5  ;;  %v1519_v36 = vrot.slane %v4013_v31, 4  ;;  %v4052_v42 = vld [vmem:[#allocation51_spill] sm:$0xff] }
 0x216   : > { %v1119_v29 = vsel %vm737_vm12, %v1118_v60, %v1117_v20  ;;  %v1510_v1 = vsel %vm737_vm12, %v1509_v6, %v1508_v40  ;;  %v1125_v60 = vsel %vm725_vm8, %v1124_v21, %v1123_v14  ;;  %v1523_v31 = vrot.slane %v4016_v41, 2 }
 0x217   : > { %v1121_v13 = vsel %vm740_vm13, %v1120_v15, %v1119_v29  ;;  %v1512_v46 = vsel %vm740_vm13, %v1511_v19, %v1510_v1 }
 0x218   : > { %v1723_v38 = vpop.permute.xlu0 %1722  ;;  %v3596_v32 = vpop.permute.xlu1 %867  ;;  %v1144_v18 = vmul.f32 %v1121_v13, %v3330_v48  ;;  %v1143_v11 = vmul.f32 %v1121_v13, %v3084_v3  ;;  %v1535_v52 = vmul.f32 %v1512_v46, %v3330_v48  ;;  %v1533_v6 = vmul.f32 %v1512_v46, %v3203_v26  ;;  %v4049_v48 = vld [vmem:[#allocation35_spill] sm:$0xff] }
 0x219   : > { %v1534_v10 = vmul.f32 %v1512_v46, %v3084_v3  ;;  %v1513_v7 = vrot.slane %v4049_v48, 7  ;;  %v1142_v3 = vmul.f32 %v1121_v13, %v3203_v26  ;;  %v4051_v26 = vld [vmem:[#allocation32_spill] sm:$0xff] }
 0x21c   : > { %v1231_v8 = vpop.permute.xlu0 %1230  ;;  %v1229_v57 = vpop.permute.xlu1 %1228 }
 0x21d   : > { %v1241_v12 = vsel %vm875_vm15, %v1229_v57, %v1231_v8  ;;  %v1258_v30 = vadd.f32 %v1231_v8, %v1144_v18  ;;  %v4048_v8 = vld [vmem:[#allocation22_spill] sm:$0xff] }
 0x21e   : > { %v1257_v16 = vadd.f32 %v1241_v12, %v1143_v11  ;;  %v1126_v34 = vrot.slane %v4048_v8, 5  ;;  %v1132_v8 = vrot.slane %v4018_v62, 2 }
 0x220   : > { %v1622_v37 = vpop.permute.xlu0 %1621  ;;  %v1620_v53 = vpop.permute.xlu1 %1619  ;;  %v1127_v11 = vsel %vm728_vm9, %v1126_v34, %v1125_v60 }
 0x221   : > { %v1631_v47 = vsel %vm875_vm15, %v1618_v33, %v1620_v53  ;;  %v1632_v54 = vsel %vm875_vm15, %v1620_v53, %v1622_v37  ;;  %v1649_v44 = vadd.f32 %v1622_v37, %v1535_v52  ;;  %v1240_v33 = vsel %vm875_vm15, %v3553_v61, %v1229_v57  ;;  %v4050_v57 = vld [vmem:[#allocation24_spill] sm:$0xff] }
 0x222   : > { %v1647_v40 = vadd.f32 %v1631_v47, %v1533_v6  ;;  %v1648_v29 = vadd.f32 %v1632_v54, %v1534_v10  ;;  %v1128_v12 = vrot.slane %v4050_v57, 4  ;;  %v1256_v27 = vadd.f32 %v1240_v33, %v1142_v3  ;;  %v2407_v33 = vld [vmem:[%s3864_s5] sm:$0x3] }
 0x223   : > { %v1521_v52 = vrot.slane %v4015_v22, 3  ;;  %v1525_v22 = vrot.slane %v4017_v2, 1 }
 0x224   : > { %v1336_v59 = vpop.permute.xlu0 %1335  ;;  %v1334_v49 = vpop.permute.xlu1 %1333 }
 0x225   : > { %v1363_v20 = vadd.f32 %v1336_v59, %v1258_v30  ;;  %v1346_v9 = vsel %vm975_vm0, %v1334_v49, %v1336_v59  ;;  %v1345_v19 = vsel %vm975_vm0, %v3585_v35, %v1334_v49  ;;  %v4053_v49 = vld [vmem:[#allocation52_spill] sm:$0xff] }
 0x226   : > { %v1362_v15 = vadd.f32 %v1346_v9, %v1257_v16  ;;  %v1361_v14 = vadd.f32 %v1345_v19, %v1256_v27 }
 0x227   : > { %1386 = vrot.lane.b32.xlu0 %v1363_v20, %s2481_s20 }
 0x228   : > { %v1727_v58 = vpop.permute.xlu0 %1726  ;;  %1384 = vrot.lane.b32.xlu1 %v1362_v15, %s2481_s20  ;;  %v1725_v45 = vpop.permute.xlu1 %1724 }
 0x229   : > { %v1754_v1 = vadd.f32 %v1727_v58, %v1649_v44  ;;  %v1736_v53 = vsel %vm975_vm0, %v1723_v38, %v1725_v45  ;;  %v1737_v37 = vsel %vm975_vm0, %v1725_v45, %v1727_v58  ;;  %v1514_v38 = vsel %vm722_vm7, %v1513_v7, %v4051_v26 }
 0x22a   : > { %v1752_v18 = vadd.f32 %v1736_v53, %v1647_v40  ;;  %v1753_v61 = vadd.f32 %v1737_v37, %v1648_v29  ;;  %v1516_v54 = vsel %vm725_vm8, %v1515_v25, %v1514_v38  ;;  %v1134_v7 = vrot.slane %v4019_v43, 1 }
 0x22b   : > { %v1786_v21 = vmul.f32 %v3546_v0, %v1754_v1  ;;  %1799 = vrot.lane.b32.xlu0 %v3551_v4, %s2482_s26  ;;  %v1518_v20 = vsel %vm728_vm9, %v1517_v63, %v1516_v54  ;;  %v994_v40 = vadd.s32 4294967295, %v2407_v33  ;;  %v4054_v26 = vmov 0.0  }
 0x22c   : > { %v1784_v13 = vmul.f32 %v3534_v28, %v1752_v18  ;;  %v1785_v35 = vmul.f32 %v3562_v51, %v1753_v61  ;;  %v866_v30 = vpop.permute.xlu0 %865  ;;  %v1624_v46 = vpop.permute.xlu1 %1623  ;;  %v1520_v10 = vsel %vm731_vm10, %v1519_v36, %v1518_v20  ;;  %v2408_v36 = vld [vmem:[#allocation2 + $0x38] sm:$0xff]  ;;  %vm1888_vm7 = vcmask 195584  }
 0x22d   : > { %v878_v16 = vsel %vm875_vm15, %v3587_v39, %v866_v30  ;;  %v879_v4 = vsel %vm875_vm15, %v866_v30, %v3596_v32  ;;  %1809 = vrot.lane.b32.xlu1 %v1786_v21, %s2482_s26  ;;  %v1129_v39 = vsel %vm731_vm10, %v1128_v12, %v1127_v11  ;;  %v1130_v32 = vrot.slane %v4014_v56, 3 }
 0x22e   : > { %v3659_v59 = vadd.f32 %v878_v16, %v4052_v42  ;;  %v3662_v47 = vadd.f32 %v879_v4, %v4053_v49  ;;  %v1522_v15 = vsel %vm734_vm11, %v1521_v52, %v1520_v10  ;;  %vm995_vm2 = vcmp.ge.s32.totalorder %v994_v40, 0  ;;  %v4055_v49 = vld [vmem:[#allocation15_spill] sm:$0xff] }
 0x22f   : > { %1382 = vrot.lane.b32.xlu0 %v1361_v14, %s2481_s20  ;;  %v1131_v41 = vsel %vm734_vm11, %v1130_v32, %v1129_v39  ;;  %v1524_v56 = vsel %vm737_vm12, %v1523_v31, %v1522_v15  ;;  %vm996_vm3 = vcmp.lt.s32.totalorder %v994_v40, 16  ;;  %v4056_v54 = vsub.s32 0, %v4055_v49 }
 0x230   : > { %v1233_v9 = vpop.permute.xlu0 %1232  ;;  %v1729_v6 = vpop.permute.xlu1 %1728  ;;  %v1526_v60 = vsel %vm740_vm13, %v1525_v22, %v1524_v56  ;;  %v1133_v48 = vsel %vm737_vm12, %v1132_v8, %v1131_v41  ;;  %vm997_vm4 = vmand %vm995_vm2, %vm996_vm3  ;;  %v4057_v56 = vsub.s32 1, %v4055_v49  ;;  %vm2484_vm8 = vmmov 0  }
 0x231   : > { %1805 = vrot.lane.b32.xlu1 %v1784_v13, %s2482_s26  ;;  %v1538_v44 = vmul.f32 %v1526_v60, %v3422_v17  ;;  %v1135_v29 = vsel %vm740_vm13, %v1134_v7, %v1133_v48  ;;  %v1536_v30 = vmul.f32 %v1526_v60, %v3213_v23  ;;  %vm1978_vm9 = vcmask 130048  }
 0x232   : > { %v1147_v3 = vmul.f32 %v1135_v29, %v3422_v17  ;;  %v1145_v57 = vmul.f32 %v1135_v29, %v3213_v23  ;;  %v1146_v12 = vmul.f32 %v1135_v29, %v3119_v5  ;;  %v1537_v5 = vmul.f32 %v2408_v36, %v1526_v60 }
 0x233   : > { %1807 = vrot.lane.b32.xlu0 %v1785_v35, %s2482_s26 }
 0x234   : > { %v1338_v34 = vpop.permute.xlu0 %1337  ;;  %v1628_v2 = vpop.permute.xlu1 %1627 }
 0x235   : > { %v1652_v62 = vadd.f32 %v1628_v2, %v1538_v44 }
 0x238   : > { %v1237_v58 = vpop.permute.xlu0 %1236  ;;  %v1733_v45 = vpop.permute.xlu1 %1732 }
 0x239   : > { %v1757_v1 = vadd.f32 %v1733_v45, %v1652_v62  ;;  %v1261_v53 = vadd.f32 %v1237_v58, %v1147_v3 }
 0x23b   : > { %v1789_v37 = vmul.f32 %v3546_v0, %v1757_v1  ;;  %v998_v0 = vsel %vm997_vm4, 1.0, %v4054_v26 }
 0x23c   : > { %v1342_v25 = vpop.permute.xlu0 %1341  ;;  %v1235_v43 = vpop.permute.xlu1 %1234  ;;  %v1003_v31 = vrot.slane %v998_v0, %v4056_v54 }
 0x23d   : > { %v1366_v19 = vadd.f32 %v1342_v25, %v1261_v53  ;;  %v1242_v18 = vsel %vm875_vm15, %v1233_v9, %v1235_v43  ;;  %v1243_v61 = vsel %vm875_vm15, %v1235_v43, %v1237_v58 }
 0x23e   : > { %v1259_v17 = vadd.f32 %v1242_v18, %v1145_v57  ;;  %v1260_v11 = vadd.f32 %v1243_v61, %v1146_v12 }
 0x23f   : > { %1392 = vrot.lane.b32.xlu1 %v1366_v19, %s2481_s20 }
 0x240   : > { %v1626_v27 = vpop.permute.xlu0 %1625  ;;  %v1340_v21 = vpop.permute.xlu1 %1339 }
 0x241   : > { %v1633_v38 = vsel %vm875_vm15, %v1624_v46, %v1626_v27  ;;  %v1634_v63 = vsel %vm875_vm15, %v1626_v27, %v1628_v2  ;;  %v1347_v13 = vsel %vm975_vm0, %v1338_v34, %v1340_v21  ;;  %v1348_v35 = vsel %vm975_vm0, %v1340_v21, %v1342_v25 }
 0x242   : > { %v1364_v14 = vadd.f32 %v1347_v13, %v1259_v17  ;;  %v1365_v16 = vadd.f32 %v1348_v35, %v1260_v11  ;;  %v1650_v4 = vadd.f32 %v1633_v38, %v1536_v30  ;;  %v1651_v52 = vadd.f32 %v1634_v63, %v1537_v5 }
 0x243   : > { %v1007_v34 = vrot.slane %v998_v0, %v4057_v56 }
 0x244   : > { %v1731_v42 = vpop.permute.xlu0 %1730  ;;  %1390 = vrot.lane.b32.xlu0 %v1365_v16, %s2481_s20  ;;  %1388 = vrot.lane.b32.xlu1 %v1364_v14, %s2481_s20  ;;  %v960_v46 = vpop.permute.xlu1 %959 }
 0x245   : > { %v1738_v39 = vsel %vm975_vm0, %v1729_v6, %v1731_v42  ;;  %v1739_v32 = vsel %vm975_vm0, %v1731_v42, %v1733_v45  ;;  %v976_v23 = vsel %vm975_vm0, %v3485_v24, %v960_v46 }
 0x246   : > { %v1755_v20 = vadd.f32 %v1738_v39, %v1650_v4  ;;  %v1756_v22 = vadd.f32 %v1739_v32, %v1651_v52  ;;  %v988_v9 = vadd.f32 %v976_v23, %v3578_v50 }
 0x248   : > { %v1787_v10 = vmul.f32 %v3534_v28, %v1755_v20  ;;  %v1788_v15 = vmul.f32 %v3562_v51, %v1756_v22  ;;  %v962_v41 = vpop.permute.xlu0 %961  ;;  %v964_v8 = vpop.permute.xlu1 %963  ;;  %v1010_v60 = vmul.f32 %v1003_v31, %v988_v9 }
 0x249   : > { %v977_v6 = vsel %vm975_vm0, %v960_v46, %v962_v41 }
 0x24a   : > { %v989_v2 = vadd.f32 %v977_v6, %v3580_v55  ;;  %1811 = vrot.lane.b32.xlu0 %v1787_v10, %s2482_s26  ;;  %1813 = vrot.lane.b32.xlu1 %v1788_v15, %s2482_s26 }
 0x24c   : > { %v966_v24 = vpop.permute.xlu0 %965  ;;  %v968_v50 = vpop.permute.xlu1 %967  ;;  %v1011_v44 = vmul.f32 %v1007_v34, %v989_v2 }
 0x24d   : > { %v978_v28 = vsel %vm975_vm0, %v964_v8, %v966_v24  ;;  %v979_v51 = vsel %vm975_vm0, %v966_v24, %v968_v50 }
 0x24e   : > { %v990_v48 = vadd.f32 %v978_v28, %v3659_v59  ;;  %v991_v7 = vadd.f32 %v979_v51, %v3662_v47  ;;  %1815 = vrot.lane.b32.xlu0 %v1789_v37, %s2482_s26  ;;  %v4058_v59 = vld [vmem:[#allocation53_spill] sm:$0xff]  ;;  %v4059_v47 = vld [vmem:[#allocation54_spill] sm:$0xff]  ;;  %s404_s26 = sand.u32 1, %s2463_s22  }
 0x24f   : > { %s2265_s28 = sshll.u32 %s404_s26, 3  ;;  %s2188_s20 = scalar_lea.sflag [#allocation4], %s404_s26 }
 0x250   : > { %v1013_v33 = vmul.f32 %v1007_v34, %v991_v7  ;;  %v1012_v40 = vmul.f32 %v1003_v31, %v990_v48  ;;  %s406_s15 = scalar_lea.vmem [#allocation3], %s2265_s28  ;;  %s2413_s28 = sshll.u32 %s2485_s25, 4  ;;  %s2414_s28 = int_to_ptr.vmem [resolvable:$false] %s2413_s28 }
 0x251   : > { %s2202_s16 = sshll.u32 %s406_s15, 4  ;;  %s2415_s1 = scalar_lea.vmem %s2414_s28, 256  ;;  %s3819_s16 = int_to_ptr.vmem [resolvable:$true] %s2202_s16 }
 0x252   : > { %s2409_s0 = scalar_lea.vmem %s3819_s16, 128  ;;  %p2416_p0 = scmp.lt.s32.totalorder %s3819_s16, %s2414_s28 }
 0x253   : > { %p2410_p11 = scmp.ne.s32.totalorder %s3819_s16, %s2409_s0  ;;  %p2417_p1 = scmp.lt.s32.totalorder %s2415_s1, %s2409_s0 }
 0x255   : > { %p2411_p12 = pnand %p2410_p11, %p2589_p5  ;;  %p2418_p2 = por %p2417_p1, %p2416_p0 }
 0x257   : > { %p2412_p13 = pneg %p2411_p12 }
 0x259   : > { %p2419_p3 = pnand %p2418_p2, %p2412_p13 }
 0x25d   : > { %v1842_v55 = vpop.permute.xlu0 %1841  ;;  %v1847_v62 = vpop.permute.xlu1 %1846 }
 0x261   : > { %v870_v29 = vpop.permute.xlu0 %869  ;;  %v970_v58 = vpop.permute.xlu1 %969 }
 0x265   : > { %v874_v45 = vpop.permute.xlu0 %873  ;;  %v974_v3 = vpop.permute.xlu1 %973 }
 0x269   : > { %v3721_v1 = vpop.permute.xlu0 %1851  ;;  %v872_v53 = vpop.permute.xlu1 %871 }
 0x26a   : > { %v880_v25 = vsel %vm875_vm15, %v870_v29, %v872_v53  ;;  %v881_v43 = vsel %vm875_vm15, %v872_v53, %v874_v45 }
 0x26b   : > { %v892_v19 = vadd.f32 %v880_v25, %v4058_v59  ;;  %v893_v18 = vadd.f32 %v881_v43, %v4059_v47 }
 0x26d   : > { %v972_v37 = vpop.permute.xlu0 %971 }
 0x26e   : > { %v980_v61 = vsel %vm975_vm0, %v970_v58, %v972_v37  ;;  %v981_v57 = vsel %vm975_vm0, %v972_v37, %v974_v3 }
 0x26f   : > { %v992_v12 = vadd.f32 %v980_v61, %v892_v19  ;;  %v993_v17 = vadd.f32 %v981_v57, %v893_v18 }
 0x271   : > { %v1015_v11 = vmul.f32 %v1007_v34, %v993_v17  ;;  %v1014_v27 = vmul.f32 %v1003_v31, %v992_v12 }
 0x27d   : > { %v1381_v21 = vpop.permute.xlu1 %1380 }
 0x27e   : > { %v1379_v38 = vpop.permute.xlu0 %1378 }
 0x27f   : > { %v1396_v13 = vsel %vm1394_vm5, %v1379_v38, %v1381_v21 }
 0x280   : > { %v1408_v36 = vadd.f32 %v1396_v13, %v1011_v44 }
 0x281   : > { %v1377_v0 = vpop.permute.xlu1 %1376 }
 0x282   : > { %v1395_v16 = vsel %vm1394_vm5, %v1377_v0, %v1379_v38 }
 0x283   : > { %v1804_v35 = vpop.permute.xlu0 %1803  ;;  %v1407_v52 = vadd.f32 %v1395_v16, %v1010_v60  ;;  %v1887_v16 = vld [vmem:[%s3866_s7 + $0x8] sm:$0xff] }
 0x285   : > { %v1802_v63 = vpop.permute.xlu1 %1801 }
 0x286   : > { %v1819_v30 = vsel %vm1817_vm6, %v1802_v63, %v1804_v35 }
 0x287   : > { %v1831_v5 = vadd.f32 %v1819_v30, %v1408_v36 }
 0x289   : > { %v1855_v42 = vadd.f32 %v1842_v55, %v1831_v5  ;;  %v1885_v5 = vld [vmem:[%s3865_s6 + $0x8] sm:$0xff] }
 0x28b   : > { %v1861_v39 = vmax.f32 %v1855_v42, 0.0 }
 0x28d   : > { %v3735_v10 = vmin.f32 %v1861_v39, 6.0 }
 0x299   : > { %v1387_v14 = vpop.permute.xlu0 %1386 }
 0x29a   : > { %v1385_v4 = vpop.permute.xlu1 %1384 }
 0x29b   : > { %v1398_v20 = vsel %vm1394_vm5, %v1385_v4, %v1387_v14  ;;  %v2483_v14 = vmov 0.0|0.0  }
 0x29c   : > { %v1410_v15 = vadd.f32 %v1398_v20, %v1013_v33  ;;  %v1974_v20 = vld [vmem:[%s3867_s8 + $0x10] sm:$0xff] }
 0x29d   : > { %v1800_v46 = vpop.permute.xlu0 %1799 }
 0x29e   : > { %v1818_v49 = vsel %vm1817_vm6, %v1800_v46, %v1802_v63 }
 0x29f   : > { %v1830_v54 = vadd.f32 %v1818_v49, %v1407_v52  ;;  %v1810_v31 = vpop.permute.xlu1 %1809 }
 0x2a1   : > { %v1854_v32 = vadd.f32 %v1842_v55, %v1830_v54  ;;  %v1383_v23 = vpop.permute.xlu0 %1382 }
 0x2a2   : > { %v1397_v22 = vsel %vm1394_vm5, %v1383_v23, %v1385_v4  ;;  %v1886_v4 = vld [vmem:[%s3866_s7] sm:$0xff]  ;;  %v1973_v23 = vld [vmem:[%s3867_s8 + $0x8] sm:$0xff] }
 0x2a3   : > { %v1860_v9 = vmax.f32 %v1854_v32, 0.0  ;;  %v1409_v8 = vadd.f32 %v1397_v22, %v1012_v40  ;;  %v1806_v56 = vpop.permute.xlu1 %1805  ;;  %v1972_v32 = vld [vmem:[%s3867_s8] sm:$0xff] }
 0x2a4   : > { %v1975_v22 = vld [vmem:[%s3868_s9] sm:$0xff] }
 0x2a5   : > { %v3737_v41 = vmin.f32 %v1860_v9, 6.0  ;;  %v1808_v34 = vpop.permute.xlu0 %1807 }
 0x2a6   : > { %v1820_v60 = vsel %vm1817_vm6, %v1806_v56, %v1808_v34  ;;  %v1821_v6 = vsel %vm1817_vm6, %v1808_v34, %v1810_v31  ;;  %v1976_v56 = vld [vmem:[%s3868_s9 + $0x8] sm:$0xff] }
 0x2a7   : > { %v1832_v2 = vadd.f32 %v1820_v60, %v1409_v8  ;;  %v1833_v24 = vadd.f32 %v1821_v6, %v1410_v15  ;;  %v1872_v50 = vadd.f32 %v3735_v10, %v3737_v41 }
 0x2a9   : > { %v1856_v44 = vadd.f32 %v1847_v62, %v1832_v2  ;;  %v1857_v28 = vadd.f32 %v1847_v62, %v1833_v24  ;;  %1873 = vadd.xlane.f32.xlu1 %v1872_v50  ;;  %v1977_v24 = vld [vmem:[%s3868_s9 + $0x10] sm:$0xff] }
 0x2ab   : > { %v1862_v51 = vmax.f32 %v1856_v44, 0.0  ;;  %v1863_v48 = vmax.f32 %v1857_v28, 0.0 }
 0x2ad   : > { %v3743_v7 = vmin.f32 %v1862_v51, 6.0  ;;  %v3745_v33 = vmin.f32 %v1863_v48, 6.0 }
 0x2af   : > { %v1875_v40 = vadd.f32 %v3745_v33, %v3743_v7 }
 0x2b1   : > { %1876 = vadd.xlane.f32.xlu0 %v1875_v40  ;;  %v1393_v55 = vpop.permute.xlu1 %1392 }
 0x2b6   : > { %v1391_v29 = vpop.permute.xlu0 %1390  ;;  %v1389_v58 = vpop.permute.xlu1 %1388 }
 0x2b7   : > { %v1399_v45 = vsel %vm1394_vm5, %v1389_v58, %v1391_v29  ;;  %v1400_v62 = vsel %vm1394_vm5, %v1391_v29, %v1393_v55 }
 0x2b8   : > { %v1411_v3 = vadd.f32 %v1399_v45, %v1014_v27  ;;  %v1412_v19 = vadd.f32 %v1400_v62, %v1015_v11  ;;  %v1884_v11 = vld [vmem:[%s3865_s6] sm:$0xff] }
 0x2b9   : > { %2302 = vmatprep.mubr.msk.f32.mxu1 %vm1888_vm7, %v1884_v11  ;;  %v2102_v62 = vld [vmem:[%s3870_s11] sm:$0xf] }
 0x2bc   : > { %v1812_v53 = vpop.permute.xlu0 %1811  ;;  %v1814_v25 = vpop.permute.xlu1 %1813 }
 0x2bd   : > { %v1822_v43 = vsel %vm1817_vm6, %v1812_v53, %v1814_v25 }
 0x2be   : > { %v1834_v59 = vadd.f32 %v1822_v43, %v1411_v3 }
 0x2c0   : > { %v1858_v47 = vadd.f32 %v3721_v1, %v1834_v59  ;;  %v1816_v18 = vpop.permute.xlu0 %1815 }
 0x2c1   : > { %v1823_v37 = vsel %vm1817_vm6, %v1814_v25, %v1816_v18 }
 0x2c2   : > { %v1835_v61 = vadd.f32 %v1823_v37, %v1412_v19  ;;  %v1864_v57 = vmax.f32 %v1858_v47, 0.0 }
 0x2c4   : > { %v1859_v12 = vadd.f32 %v3721_v1, %v1835_v61  ;;  %v3755_v21 = vmin.f32 %v1864_v57, 6.0 }
 0x2c6   : > { %v1865_v17 = vmax.f32 %v1859_v12, 0.0 }
 0x2c8   : > { %v3757_v27 = vmin.f32 %v1865_v17, 6.0 }
 0x2ca   : > { %v1878_v0 = vadd.f32 %v3757_v27, %v3755_v21 }
 0x2cc   : > { %1879 = vadd.xlane.f32.xlu0 %v1878_v0 }
 0x336   : > { %v1874_v38 = vpop.xlane.xlu1 %1873 }
 0x337   : > { %v1881_v13 = vmul.f32 0.00390625, %v1874_v38 }
 0x33e   : > { %v1877_v63 = vpop.xlane.xlu0 %1876 }
 0x33f   : > { %v1882_v1 = vmul.f32 0.00390625, %v1877_v63 }
 0x341   : > { %v2318_v35 = vpack.c.bf16 %v1882_v1, %v1881_v13 }
 0x343   : > { %2319 = vmatprep.subr.bf16.mxu1 %v2318_v35 }
 0x344   : > { %2321 = vmatpush3.bf16.msra.mxu1 %v2318_v35 }
 0x359   : > { %v1880_v30 = vpop.xlane.xlu0 %1879 }
 0x35a   : > { %v1883_v36 = vmul.f32 0.00390625, %v1880_v30 }
 0x35c   : > { %2300 = vmatprep.subr.mxu1 %v1883_v36 }
 0x35d   : > { %2301 = vmatpush3.msra.mxu1 %v1883_v36 }
 0x35e   : > { %2303 = vmatmul.mubr.msk.f32.vlgmr.msra.gmra.mrb[0].mxu1 %vm1888_vm7, %v1885_v5  ;;  %2322 = vmatprep.subr.bf16.mxu1 %v2483_v14 }
 0x35f   : > { %2309 = vmatprep.mubr.msk.f32.mxu1 %vm2484_vm8, %v4054_v26 }
 0x431   : > { %v2304_v52 = vpop.f32.mrb[0].mxu1 }
 0x432   : > { %v1967_v42 = vadd.f32 %v2304_v52, %v1887_v16  ;;  %v1961_v46 = vpop.f32.mrb[1].mxu1 }
 0x433   : > { %v1962_v49 = vadd.f32 %v1961_v46, %v1886_v4 }
 0x434   : > { %v1971_v54 = vmax.f32 %v1967_v42, 0.0 }
 0x435   : > { %v1970_v31 = vmax.f32 %v1962_v49, 0.0 }
 0x437   : > { %v2323_v39 = vpack.c.bf16 %v1971_v54, %v1970_v31 }
 0x439   : > { %2324 = vmatpush3.bf16.msra.mxu1 %v2323_v39 }
 0x43c   : > { %2310 = vmatmul.mubr.msk.f32.vlgmr.msra.gmra.mrb[2].mxu1 %vm1978_vm9, %v1972_v32 }
 0x43d   : > { %2312 = vmatprep.mubr.msk.f32.mxu1 %vm2484_vm8, %v4054_v26 }
 0x440   : > { %2313 = vmatmul.mubr.msk.f32.gmra.mrb[4].mxu1 %vm1978_vm9, %v1973_v23 }
 0x441   : > { %2315 = vmatprep.mubr.msk.f32.mxu1 %vm2484_vm8, %v4054_v26 }
 0x444   : > { %2316 = vmatmul.mubr.msk.f32.gmra.mrb[6].mxu1 %vm1978_vm9, %v1974_v20 }
 0x50f   : > { %v2054_v9 = vpop.f32.mrb[2].mxu1 }
 0x510   : > { %v2055_v15 = vadd.f32 %v2054_v9, %v1975_v22  ;;  %v2311_v8 = vpop.f32.mrb[3].mxu1 }
 0x512   : > { %v2068_v34 = vmul.f32 0.16666667, %v2055_v15 }
 0x513   : > { %v2059_v60 = vpop.f32.mrb[4].mxu1 }
 0x514   : > { %v2071_v6 = vadd.f32 0.5, %v2068_v34  ;;  %v2060_v26 = vadd.f32 %v2059_v60, %v1976_v56  ;;  %v2314_v2 = vpop.f32.mrb[5].mxu1 }
 0x516   : > { %v2074_v50 = vmax.f32 %v2071_v6, 0.0  ;;  %v2069_v44 = vmul.f32 0.16666667, %v2060_v26 }
 0x517   : > { %v2064_v28 = vpop.f32.mrb[6].mxu1 }
 0x518   : > { %v2077_v51 = vmin.f32 %v2074_v50, 1.0  ;;  %v2072_v48 = vadd.f32 0.5, %v2069_v44  ;;  %v2065_v40 = vadd.f32 %v2064_v28, %v1977_v24  ;;  %v2317_v55 = vpop.f32.mrb[7].mxu1 }
 0x51a   : > { %v2075_v29 = vmax.f32 %v2072_v48, 0.0  ;;  %v2070_v58 = vmul.f32 0.16666667, %v2065_v40  ;;  %2082 = vperm.xlu1 %2400, %v2077_v51  }
 0x51c   : > { %v2078_v45 = vmin.f32 %v2075_v29, 1.0  ;;  %v2073_v3 = vadd.f32 0.5, %v2070_v58 }
 0x51e   : > { %v2076_v53 = vmax.f32 %v2073_v3, 0.0  ;;  %2087 = vperm.xlu0 %2399, %v2078_v45  }
 0x520   : > { %v2079_v25 = vmin.f32 %v2076_v53, 1.0 }
 0x522   : > { %2092 = vperm.xlu1 %2400, %v2079_v25  }
 0x526   : > { %2105 = vperm.xlu1 %2400, %v2102_v62  }
 0x599   : > { %v2083_v43 = vpop.permute.xlu1 %2082 }
 0x59a   : > { %v2095_v19 = vmul.f32 %v2083_v43, %v3737_v41  ;;  %v2096_v47 = vmul.f32 %v2083_v43, %v3735_v10  ;;  %v2101_v41 = vld [vmem:[%s3869_s10] sm:$0xf] }
 0x59d   : > { %v2088_v59 = vpop.permute.xlu0 %2087 }
 0x59e   : > { %v2097_v18 = vmul.f32 %v2088_v59, %v3743_v7  ;;  %v2098_v37 = vmul.f32 %v2088_v59, %v3745_v33 }
 0x5a0   : > { %v2325_v61 = vpack.c.bf16 %v2098_v37, %v2096_v47  ;;  %v2327_v57 = vpack.c.bf16 %v2097_v18, %v2095_v19 }
 0x5a1   : > { %v2093_v12 = vpop.permute.xlu1 %2092 }
 0x5a2   : > { %v2100_v17 = vmul.f32 %v2093_v12, %v3757_v27  ;;  %2326 = vmatprep.subr.bf16.mxu0 %v2325_v61  ;;  %v2099_v0 = vmul.f32 %v2093_v12, %v3755_v21 }
 0x5a3   : > { %2328 = vmatpush1.bf16.msra.mxu0 %v2327_v57 }
 0x5a4   : > { %2115 = vmatprep.subr.mxu0 %v2100_v17 }
 0x5a5   : > { %v2106_v10 = vpop.permute.xlu1 %2105 }
 0x5a7   : > { %2116 = vmatpush1.msra.mxu0 %v2099_v0 }
 0x5a8   : > { %2278 = vmatmul.mubr.msk.f32.vlgmr.msra.gmra.mrb[6].mxu0 %vm1888_vm7, %v2101_v41 }
 0x67b   : > { %v2177_v7 = vpop.f32.mrb[6].mxu0 }
 0x67c   : > { %v2178_v33 = vadd.f32 %v2177_v7, %v2106_v10  ;;  %v2179_v11 = vpop.f32.mrb[7].mxu0 }
 0x67d   : > { %v2180_v27 = vadd.f32 %v2179_v11, %v2106_v10 }
 0x67f   : > { %v2184_v38 = vcombine.low %v2178_v33, %v2180_v27 }
 0x681   : > { %2186 = vst [vmem:[%s406_s15] sm:$0xff] %v2184_v38 }
 0x682   : > { %2422 = shalt.err (!%p2419_p3)
}
 0x683   : > { %s2423_s26 = scalar_lea.hbm %s3817_s19, 128  ;;  %s2427_s17 = scalar_lea.hbm %s3871_s12, 256 }
 0x684   : > { %p2424_p4 = scmp.ne.s32.totalorder %s3817_s19, %s2423_s26  ;;  %p2428_p9 = scmp.lt.u32.totalorder %s3817_s19, %s3871_s12 }
 0x685   : > { %p2429_p10 = scmp.lt.u32.totalorder %s2427_s17, %s2423_s26  ;;  %p2431_p12 = scmp.lt.u32.totalorder %s2423_s26, %s3817_s19 }
 0x686   : > { %p2425_p7 = pnand %p2424_p4, %p2589_p5 }
 0x687   : > { %p2430_p11 = por %p2429_p10, %p2428_p9 }
 0x688   : > { %p2426_p8 = pneg %p2425_p7 }
 0x689   : > { %p2432_p13 = por %p2431_p12, %p2430_p11 }
 0x68b   : > { %p2433_p0 = pnand %p2432_p13, %p2426_p8 }
 0x68d   : > { %2436 = shalt.err (!%p2433_p0)
}
 0x68e   : > { %2329 = dma.vmem_to_hbm [thread:$0]  (%p2589_p5), %s3819_s16, 128, %s3817_s19, %s2188_s20  }
 0x68f PF: > { %p2335_p1 = scmp.ge.s32.totalorder %s2471_s24, 2  ;;  %s2214_s0 = sand.u32 1, %s2459_s21  }
 0x690   : > { %s2215_s1 = scalar_lea.sflag [#allocation4], %s2214_s0 }
 0x691   : > { %p2332_p2 = pnand %p2335_p1, %p2593_p6 }
 0x693   : > { %2454 = dma.done.wait (!%p2332_p2), %s2215_s1, 128  }
 0x694   : > { %2456 = vsyncadd (!%p2332_p2), %s2215_s1, 4294967168  ;;  %p22_p3 = scmp.ge.s32.totalorder %s2576_s27, 4   ;;  %s4060_s21 = smov %s2463_s22 }
 0x695   : > { %s4061_s22 = smov %s2467_s23  ;;  %s4062_s23 = smov %s2587_s30 }
 0x696   : > { %s4063_s24 = smov %s2576_s27  ;;  %24 = sbr.rel (!%p22_p3) target bundleno = 6 (0x6), region = 103 }
 0x69d   :  { %2220 = vsyncpa [#allocation4], 1 }
 0x69e   :  { %2222 = vsyncpa [#allocation4 + $0x1], 1 }

</bundles_post_ra>
